<compile_context>
chip_gen: v5e
topology: v5e:2x2
jax: 0.10.0
libtpu: 0.0.40
codegen_flags: <defaults>
</compile_context>

<pallas_src>
import functools

import jax
import jax.numpy as jnp
from jax.experimental import pallas as pl
from jax.experimental.pallas import tpu as pltpu


def _vni_kernel(cutoff, bt, num_atoms_ref, cell_ref, cinv_ref, pos_ref,
                wrapped_ref, dist_ref, adj_ref):
    Ap = pos_ref.shape[2]
    cutoff_sq = cutoff * cutoff
    base = pl.program_id(0) * bt

    # Hoisted index helpers. Only `not_self` is (Ap, Ap), built once per grid
    # step from broadcast 1-D iotas (no full 2-D iota materialization).
    ids_row = jax.lax.broadcasted_iota(jnp.int32, (1, Ap), 1)     # (1, Ap)
    ids_col = jax.lax.broadcasted_iota(jnp.int32, (Ap, 1), 0)     # (Ap, 1)
    not_self = ids_col != ids_row                                 # (Ap, Ap)

    for t in range(bt):         # unrolled: bt is small/static, budgeted below
        b = base + t
        n_valid = num_atoms_ref[b]

        # 18 cell / inverse-cell scalars from SMEM (shared by wrap & dist).
        c = [[cell_ref[9 * b + 3 * i + j] for j in range(3)] for i in range(3)]
        ci = [[cinv_ref[9 * b + 3 * i + j] for j in range(3)] for i in range(3)]

        # Lane-dense position rows: (1, Ap) each.
        p = [pos_ref[t, d:d + 1, :] for d in range(3)]

        # --- 1) fractional coordinates wrapped into [0, 1)  (Atoms.wrap) ---
        frac = []
        for k in range(3):
            f = p[0] * ci[0][k] + p[1] * ci[1][k] + p[2] * ci[2][k]
            frac.append(f - jnp.floor(f))                         # (1, Ap)

        # --- 2) wrapped cartesian = frac @ cell; single (3, Ap) store ---
        vrow = ids_row < n_valid                                  # (1, Ap)
        w_rows = []
        for l in range(3):
            w = frac[0] * c[0][l] + frac[1] * c[1][l] + frac[2] * c[2][l]
            w_rows.append(jnp.where(vrow, w, 0.0))
        wrapped_ref[t] = jnp.concatenate(w_rows, axis=0).astype(
            wrapped_ref.dtype)

        # --- 3) minimum-image pairwise distances + cutoff adjacency ---
        # (Ap,1) column minus (1,Ap) row: no (Ap,Ap) transpose on the XLU.
        dfrac = []
        for k in range(3):
            col = jnp.transpose(frac[k])                          # (Ap, 1)
            d = col - frac[k]                                     # (Ap, Ap)
            dfrac.append(d - jnp.floor(d + 0.5))                  # MIC wrap

        # Fused dc -> d2: accumulate squared distance per cartesian component,
        # never materializing the dc list as separate (Ap,Ap) temporaries.
        d2 = None
        for l in range(3):
            dc_l = (dfrac[0] * c[0][l] + dfrac[1] * c[1][l]
                    + dfrac[2] * c[2][l])
            contrib = dc_l * dc_l
            d2 = contrib if d2 is None else d2 + contrib

        vcol = ids_col < n_valid                                  # (Ap, 1)
        valid_pair = vcol & vrow                                  # (Ap, Ap)
        within = d2 <= cutoff_sq          # f32 squared-distance cutoff (no sqrt dep)

        adj_ref[t] = (within & not_self & valid_pair).astype(adj_ref.dtype)
        dist_ref[t] = jnp.where(valid_pair, jnp.sqrt(d2), 0.0).astype(
            dist_ref.dtype)


def vni_forward(pos, cell, num_atoms, cutoff, block_b=16):
    """Pallas implementation of the VNI numeric core.

    pos:       [B, A, 3] float32 padded positions (ragged atoms, padded)
    cell:      [B, 3, 3] float32 lattice row-vectors (ASE convention)
    num_atoms: [B] int32 valid-atom counts
    cutoff:    python float, neighbour cutoff radius

    Returns:
      wrapped [B, A, 3]  float32
      dist    [B, Ap, Ap] bfloat16  (atom padding retained; padded rows/cols 0)
      adj     [B, Ap, Ap] int8      (atom padding retained; padded rows/cols 0)
    where Ap = A rounded up to a multiple of 128.
    """
    B, A, _ = pos.shape
    pos = pos.astype(jnp.float32)
    cell = cell.astype(jnp.float32)
    num_atoms = num_atoms.astype(jnp.int32)

    # Atoms on the 128-lane axis, padded to a multiple of 128.
    Ap = ((A + 127) // 128) * 128

    # --- generation-aware VMEM budgeting ---------------------------------
    try:
        info = pltpu.get_tpu_info()
        vmem_cap = int(getattr(info, "vmem_capacity_bytes", 64 * 1024 * 1024))
    except Exception:                      # pragma: no cover - conservative
        vmem_cap = 64 * 1024 * 1024
    block_budget = max(8 << 20, int(vmem_cap * 0.40))
    vmem_limit = max(32 << 20, min(int(vmem_cap * 0.75), 100 << 20))

    # Per-structure bytes: double-buffered in/out blocks PLUS the (Ap,Ap) f32
    # elementwise intermediates the scheduler keeps live while computing it.
    io_per_struct = 2 * 3 * Ap * 4 + Ap * Ap * (2 + 1)   # pos+wrapped, dist bf16 + adj i8
    interm_per_struct = 8 * Ap * Ap * 4                  # dfrac/d2/masks etc.
    per_struct = 2 * io_per_struct + interm_per_struct

    bt = max(1, min(block_b, block_budget // per_struct))
    bt = min(bt, B)
    if B >= 2:
        # Guarantee >= 2 grid steps so the single "parallel" axis can be
        # sharded across v7x's two TensorCores (near-free on v5e/v6e).
        bt = min(bt, pl.cdiv(B, 2))
    num_steps = pl.cdiv(B, bt)
    if num_steps > 1:
        bt = pl.cdiv(B, num_steps)        # balance the tail across grid steps
        num_steps = pl.cdiv(B, bt)
    Bp = num_steps * bt

    # Pad + transpose positions to lane-dense [Bp, 3, Ap].
    pos_t = jnp.transpose(pos, (0, 2, 1))
    pos_t = jnp.pad(pos_t, ((0, Bp - B), (0, 0), (0, Ap - A)))
    if Bp > B:
        pad_cells = jnp.broadcast_to(jnp.eye(3, dtype=jnp.float32),
                                     (Bp - B, 3, 3))
        cell_p = jnp.concatenate([cell, pad_cells], axis=0)
    else:
        cell_p = cell
    num_atoms_p = jnp.pad(num_atoms, (0, Bp - B))   # 0 atoms -> fully masked

    cinv = jnp.linalg.inv(cell_p)                    # glue, plain JAX
    # NOTE: flat 1-D SMEM residency (next_pow2(36*Bp) bytes) — fine up to
    # thousands of structures per call; known-good lowering path.
    cell_flat = cell_p.reshape(Bp * 9)
    cinv_flat = cinv.reshape(Bp * 9)

    kernel = functools.partial(_vni_kernel, float(cutoff), bt)

    grid_spec = pltpu.PrefetchScalarGridSpec(
        num_scalar_prefetch=1,
        grid=(num_steps,),
        in_specs=[
            pl.BlockSpec(memory_space=pltpu.MemorySpace.SMEM),    # cell  (Bp*9,)
            pl.BlockSpec(memory_space=pltpu.MemorySpace.SMEM),    # cinv  (Bp*9,)
            pl.BlockSpec((bt, 3, Ap), lambda g, na: (g, 0, 0)),   # pos_t
        ],
        out_specs=[
            pl.BlockSpec((bt, 3, Ap), lambda g, na: (g, 0, 0)),   # wrapped_t
            pl.BlockSpec((bt, Ap, Ap), lambda g, na: (g, 0, 0)),  # dist (bf16)
            pl.BlockSpec((bt, Ap, Ap), lambda g, na: (g, 0, 0)),  # adj (int8)
        ],
    )

    wrapped_t, dist, adj = pl.pallas_call(
        kernel,
        grid_spec=grid_spec,
        out_shape=(
            jax.ShapeDtypeStruct((Bp, 3, Ap), jnp.float32),
            jax.ShapeDtypeStruct((Bp, Ap, Ap), jnp.bfloat16),
            jax.ShapeDtypeStruct((Bp, Ap, Ap), jnp.int8),
        ),
        compiler_params=pltpu.CompilerParams(
            dimension_semantics=("parallel",),
            vmem_limit_bytes=vmem_limit,
        ),
    )(num_atoms_p, cell_flat, cinv_flat, pos_t)

    # wrapped is tiny: slice/transpose back to the module's [B, A, 3] layout.
    wrapped = jnp.transpose(wrapped_t[:B, :, :A], (0, 2, 1))
    # dist/adj: batch-only slice (contiguous); atom padding kept (zero/false)
    # so the dominant outputs are not re-copied on the host.
    dist = dist[:B]
    adj = adj[:B]
    return wrapped, dist, adj


def _reference(pos, cell, num_atoms, cutoff):
    """Pure-JAX reference for correctness checking (valid A x A region)."""
    hp = jax.lax.Precision.HIGHEST
    B, A, _ = pos.shape
    cinv = jnp.linalg.inv(cell)
    frac = jnp.einsum('bad,bde->bae', pos, cinv, precision=hp)
    frac = frac - jnp.floor(frac)
    wrapped = jnp.einsum('bad,bde->bae', frac, cell, precision=hp)
    ids = jnp.arange(A)
    vmask = ids[None, :] < num_atoms[:, None]                     # (B, A)
    wrapped = wrapped * vmask[..., None]
    dfrac = frac[:, :, None, :] - frac[:, None, :, :]
    dfrac = dfrac - jnp.floor(dfrac + 0.5)
    dcart = jnp.einsum('bijk,bkl->bijl', dfrac, cell, precision=hp)
    dist = jnp.sqrt(jnp.sum(dcart * dcart, axis=-1))
    vpair = vmask[:, :, None] & vmask[:, None, :]
    not_self = ids[:, None] != ids[None, :]
    adj = jnp.where((dist <= cutoff) & not_self[None, :, :] & vpair, 1.0, 0.0)
    dist = jnp.where(vpair, dist, 0.0)
    return wrapped, dist, adj


if __name__ == "__main__":
    B, A = 2, 8                 # 2 structures, padded to 8 atoms each
    cutoff = 3.0                # args.cutoff

    key = jax.random.PRNGKey(0)
    k_cell, k_pos = jax.random.split(key)

    base_cells = jnp.stack([
        jnp.diag(jnp.array([5.0, 6.0, 7.0], jnp.float32)),
        jnp.diag(jnp.array([4.5, 5.5, 6.5], jnp.float32)),
    ])
    cell = base_cells + 0.1 * jax.random.normal(k_cell, (B, 3, 3),
                                                dtype=jnp.float32)
    # positions deliberately outside the cell so wrap() matters
    pos = jax.random.uniform(k_pos, (B, A, 3), dtype=jnp.float32,
                             minval=-3.0, maxval=10.0)
    num_atoms = jnp.array([8, 6], dtype=jnp.int32)   # ragged counts (padded)

    wrapped, dist, adj = vni_forward(pos, cell, num_atoms, cutoff)
    jax.block_until_ready((wrapped, dist, adj))

    w_ref, d_ref, a_ref = _reference(pos, cell, num_atoms, cutoff)
    Ap = dist.shape[-1]
    assert wrapped.shape == (B, A, 3)
    assert dist.shape == (B, Ap, Ap) and adj.shape == (B, Ap, Ap)
    assert dist.dtype == jnp.bfloat16 and adj.dtype == jnp.int8

    assert jnp.allclose(wrapped, w_ref, atol=1e-4, rtol=1e-4)
    # dist is bf16 (review-approved accuracy tradeoff) -> looser tolerance.
    assert jnp.allclose(dist[:, :A, :A].astype(jnp.float32), d_ref,
                        atol=2e-2, rtol=2e-2)
    assert jnp.allclose(adj[:, :A, :A].astype(jnp.float32), a_ref)
    # atom-padded region must be zero / false (consumers rely on this).
    assert not bool(jnp.any(dist[:, A:, :].astype(jnp.float32) != 0))
    assert not bool(jnp.any(dist[:, :, A:].astype(jnp.float32) != 0))
    assert not bool(jnp.any(adj[:, A:, :] != 0))
    assert not bool(jnp.any(adj[:, :, A:] != 0))

    print("KERNEL_OK")
</pallas_src>

<mosaic_0001>
module attributes {stable_mosaic.version = 11 : i64} {
  func.func @_vni_kernel(%arg0: i32, %arg1: memref<2xi32, #tpu.memory_space<smem>>, %arg2: memref<18xf32, #tpu.memory_space<smem>>, %arg3: memref<18xf32, #tpu.memory_space<smem>>, %arg4: memref<1x3x128xf32, #tpu.memory_space<vmem>>, %arg5: memref<1x3x128xf32, #tpu.memory_space<vmem>>, %arg6: memref<1x128x128xbf16, #tpu.memory_space<vmem>>, %arg7: memref<1x128x128xi8, #tpu.memory_space<vmem>>) attributes {dimension_semantics = [#tpu.dimension_semantics<parallel>], iteration_bounds = array<i64: 2>, scalar_prefetch = 1 : i64, scratch_operands = 0 : i64, tpu.core_type = #tpu.core_type<tc>, window_params = [{transform_indices = @transform_0, window_bounds = array<i64: 18>}, {transform_indices = @transform_1, window_bounds = array<i64: 18>}, {transform_indices = @transform_2, window_bounds = array<i64: 1, 3, 128>}, {transform_indices = @transform_3, window_bounds = array<i64: 1, 3, 128>}, {transform_indices = @transform_4, window_bounds = array<i64: 1, 128, 128>}, {transform_indices = @transform_5, window_bounds = array<i64: 1, 128, 128>}]} {
    %c1_i32 = arith.constant 1 : i32
    %0 = arith.muli %arg0, %c1_i32 : i32
    %1 = tpu.iota {dimensions = array<i32: 1>} : vector<1x128xi32>
    %2 = tpu.iota {dimensions = array<i32: 0>} : vector<128x1xi32>
    %3 = vector.broadcast %2 : vector<128x1xi32> to vector<128x128xi32>
    %4 = vector.broadcast %1 : vector<1x128xi32> to vector<128x128xi32>
    %5 = arith.cmpi ne, %3, %4 : vector<128x128xi32>
    %c0_i32 = arith.constant 0 : i32
    %6 = arith.addi %0, %c0_i32 : i32
    %7 = arith.index_cast %6 : i32 to index
    %8 = memref.load %arg1[%7] : memref<2xi32, #tpu.memory_space<smem>>
    %c9_i32 = arith.constant 9 : i32
    %9 = arith.muli %c9_i32, %6 : i32
    %c0_i32_0 = arith.constant 0 : i32
    %10 = arith.addi %9, %c0_i32_0 : i32
    %c0_i32_1 = arith.constant 0 : i32
    %11 = arith.addi %10, %c0_i32_1 : i32
    %12 = arith.index_cast %11 : i32 to index
    %13 = memref.load %arg2[%12] : memref<18xf32, #tpu.memory_space<smem>>
    %c9_i32_2 = arith.constant 9 : i32
    %14 = arith.muli %c9_i32_2, %6 : i32
    %c0_i32_3 = arith.constant 0 : i32
    %15 = arith.addi %14, %c0_i32_3 : i32
    %c1_i32_4 = arith.constant 1 : i32
    %16 = arith.addi %15, %c1_i32_4 : i32
    %17 = arith.index_cast %16 : i32 to index
    %18 = memref.load %arg2[%17] : memref<18xf32, #tpu.memory_space<smem>>
    %c9_i32_5 = arith.constant 9 : i32
    %19 = arith.muli %c9_i32_5, %6 : i32
    %c0_i32_6 = arith.constant 0 : i32
    %20 = arith.addi %19, %c0_i32_6 : i32
    %c2_i32 = arith.constant 2 : i32
    %21 = arith.addi %20, %c2_i32 : i32
    %22 = arith.index_cast %21 : i32 to index
    %23 = memref.load %arg2[%22] : memref<18xf32, #tpu.memory_space<smem>>
    %c9_i32_7 = arith.constant 9 : i32
    %24 = arith.muli %c9_i32_7, %6 : i32
    %c3_i32 = arith.constant 3 : i32
    %25 = arith.addi %24, %c3_i32 : i32
    %c0_i32_8 = arith.constant 0 : i32
    %26 = arith.addi %25, %c0_i32_8 : i32
    %27 = arith.index_cast %26 : i32 to index
    %28 = memref.load %arg2[%27] : memref<18xf32, #tpu.memory_space<smem>>
    %c9_i32_9 = arith.constant 9 : i32
    %29 = arith.muli %c9_i32_9, %6 : i32
    %c3_i32_10 = arith.constant 3 : i32
    %30 = arith.addi %29, %c3_i32_10 : i32
    %c1_i32_11 = arith.constant 1 : i32
    %31 = arith.addi %30, %c1_i32_11 : i32
    %32 = arith.index_cast %31 : i32 to index
    %33 = memref.load %arg2[%32] : memref<18xf32, #tpu.memory_space<smem>>
    %c9_i32_12 = arith.constant 9 : i32
    %34 = arith.muli %c9_i32_12, %6 : i32
    %c3_i32_13 = arith.constant 3 : i32
    %35 = arith.addi %34, %c3_i32_13 : i32
    %c2_i32_14 = arith.constant 2 : i32
    %36 = arith.addi %35, %c2_i32_14 : i32
    %37 = arith.index_cast %36 : i32 to index
    %38 = memref.load %arg2[%37] : memref<18xf32, #tpu.memory_space<smem>>
    %c9_i32_15 = arith.constant 9 : i32
    %39 = arith.muli %c9_i32_15, %6 : i32
    %c6_i32 = arith.constant 6 : i32
    %40 = arith.addi %39, %c6_i32 : i32
    %c0_i32_16 = arith.constant 0 : i32
    %41 = arith.addi %40, %c0_i32_16 : i32
    %42 = arith.index_cast %41 : i32 to index
    %43 = memref.load %arg2[%42] : memref<18xf32, #tpu.memory_space<smem>>
    %c9_i32_17 = arith.constant 9 : i32
    %44 = arith.muli %c9_i32_17, %6 : i32
    %c6_i32_18 = arith.constant 6 : i32
    %45 = arith.addi %44, %c6_i32_18 : i32
    %c1_i32_19 = arith.constant 1 : i32
    %46 = arith.addi %45, %c1_i32_19 : i32
    %47 = arith.index_cast %46 : i32 to index
    %48 = memref.load %arg2[%47] : memref<18xf32, #tpu.memory_space<smem>>
    %c9_i32_20 = arith.constant 9 : i32
    %49 = arith.muli %c9_i32_20, %6 : i32
    %c6_i32_21 = arith.constant 6 : i32
    %50 = arith.addi %49, %c6_i32_21 : i32
    %c2_i32_22 = arith.constant 2 : i32
    %51 = arith.addi %50, %c2_i32_22 : i32
    %52 = arith.index_cast %51 : i32 to index
    %53 = memref.load %arg2[%52] : memref<18xf32, #tpu.memory_space<smem>>
    %c9_i32_23 = arith.constant 9 : i32
    %54 = arith.muli %c9_i32_23, %6 : i32
    %c0_i32_24 = arith.constant 0 : i32
    %55 = arith.addi %54, %c0_i32_24 : i32
    %c0_i32_25 = arith.constant 0 : i32
    %56 = arith.addi %55, %c0_i32_25 : i32
    %57 = arith.index_cast %56 : i32 to index
    %58 = memref.load %arg3[%57] : memref<18xf32, #tpu.memory_space<smem>>
    %c9_i32_26 = arith.constant 9 : i32
    %59 = arith.muli %c9_i32_26, %6 : i32
    %c0_i32_27 = arith.constant 0 : i32
    %60 = arith.addi %59, %c0_i32_27 : i32
    %c1_i32_28 = arith.constant 1 : i32
    %61 = arith.addi %60, %c1_i32_28 : i32
    %62 = arith.index_cast %61 : i32 to index
    %63 = memref.load %arg3[%62] : memref<18xf32, #tpu.memory_space<smem>>
    %c9_i32_29 = arith.constant 9 : i32
    %64 = arith.muli %c9_i32_29, %6 : i32
    %c0_i32_30 = arith.constant 0 : i32
    %65 = arith.addi %64, %c0_i32_30 : i32
    %c2_i32_31 = arith.constant 2 : i32
    %66 = arith.addi %65, %c2_i32_31 : i32
    %67 = arith.index_cast %66 : i32 to index
    %68 = memref.load %arg3[%67] : memref<18xf32, #tpu.memory_space<smem>>
    %c9_i32_32 = arith.constant 9 : i32
    %69 = arith.muli %c9_i32_32, %6 : i32
    %c3_i32_33 = arith.constant 3 : i32
    %70 = arith.addi %69, %c3_i32_33 : i32
    %c0_i32_34 = arith.constant 0 : i32
    %71 = arith.addi %70, %c0_i32_34 : i32
    %72 = arith.index_cast %71 : i32 to index
    %73 = memref.load %arg3[%72] : memref<18xf32, #tpu.memory_space<smem>>
    %c9_i32_35 = arith.constant 9 : i32
    %74 = arith.muli %c9_i32_35, %6 : i32
    %c3_i32_36 = arith.constant 3 : i32
    %75 = arith.addi %74, %c3_i32_36 : i32
    %c1_i32_37 = arith.constant 1 : i32
    %76 = arith.addi %75, %c1_i32_37 : i32
    %77 = arith.index_cast %76 : i32 to index
    %78 = memref.load %arg3[%77] : memref<18xf32, #tpu.memory_space<smem>>
    %c9_i32_38 = arith.constant 9 : i32
    %79 = arith.muli %c9_i32_38, %6 : i32
    %c3_i32_39 = arith.constant 3 : i32
    %80 = arith.addi %79, %c3_i32_39 : i32
    %c2_i32_40 = arith.constant 2 : i32
    %81 = arith.addi %80, %c2_i32_40 : i32
    %82 = arith.index_cast %81 : i32 to index
    %83 = memref.load %arg3[%82] : memref<18xf32, #tpu.memory_space<smem>>
    %c9_i32_41 = arith.constant 9 : i32
    %84 = arith.muli %c9_i32_41, %6 : i32
    %c6_i32_42 = arith.constant 6 : i32
    %85 = arith.addi %84, %c6_i32_42 : i32
    %c0_i32_43 = arith.constant 0 : i32
    %86 = arith.addi %85, %c0_i32_43 : i32
    %87 = arith.index_cast %86 : i32 to index
    %88 = memref.load %arg3[%87] : memref<18xf32, #tpu.memory_space<smem>>
    %c9_i32_44 = arith.constant 9 : i32
    %89 = arith.muli %c9_i32_44, %6 : i32
    %c6_i32_45 = arith.constant 6 : i32
    %90 = arith.addi %89, %c6_i32_45 : i32
    %c1_i32_46 = arith.constant 1 : i32
    %91 = arith.addi %90, %c1_i32_46 : i32
    %92 = arith.index_cast %91 : i32 to index
    %93 = memref.load %arg3[%92] : memref<18xf32, #tpu.memory_space<smem>>
    %c9_i32_47 = arith.constant 9 : i32
    %94 = arith.muli %c9_i32_47, %6 : i32
    %c6_i32_48 = arith.constant 6 : i32
    %95 = arith.addi %94, %c6_i32_48 : i32
    %c2_i32_49 = arith.constant 2 : i32
    %96 = arith.addi %95, %c2_i32_49 : i32
    %97 = arith.index_cast %96 : i32 to index
    %98 = memref.load %arg3[%97] : memref<18xf32, #tpu.memory_space<smem>>
    %c0 = arith.constant 0 : index
    %c0_50 = arith.constant 0 : index
    %c0_51 = arith.constant 0 : index
    %99 = vector.load %arg4[%c0, %c0_50, %c0_51] : memref<1x3x128xf32, #tpu.memory_space<vmem>>, vector<1x1x128xf32>
    %100 = vector.shape_cast %99 : vector<1x1x128xf32> to vector<1x128xf32>
    %c0_52 = arith.constant 0 : index
    %c1 = arith.constant 1 : index
    %c0_53 = arith.constant 0 : index
    %101 = vector.load %arg4[%c0_52, %c1, %c0_53] : memref<1x3x128xf32, #tpu.memory_space<vmem>>, vector<1x1x128xf32>
    %102 = vector.shape_cast %101 : vector<1x1x128xf32> to vector<1x128xf32>
    %c0_54 = arith.constant 0 : index
    %c2 = arith.constant 2 : index
    %c0_55 = arith.constant 0 : index
    %103 = vector.load %arg4[%c0_54, %c2, %c0_55] : memref<1x3x128xf32, #tpu.memory_space<vmem>>, vector<1x1x128xf32>
    %104 = vector.shape_cast %103 : vector<1x1x128xf32> to vector<1x128xf32>
    %105 = vector.broadcast %58 : f32 to vector<1x128xf32>
    %106 = arith.mulf %100, %105 : vector<1x128xf32>
    %107 = vector.broadcast %73 : f32 to vector<1x128xf32>
    %108 = arith.mulf %102, %107 : vector<1x128xf32>
    %109 = arith.addf %106, %108 : vector<1x128xf32>
    %110 = vector.broadcast %88 : f32 to vector<1x128xf32>
    %111 = arith.mulf %104, %110 : vector<1x128xf32>
    %112 = arith.addf %109, %111 : vector<1x128xf32>
    %113 = math.floor %112 : vector<1x128xf32>
    %114 = arith.subf %112, %113 : vector<1x128xf32>
    %115 = vector.broadcast %63 : f32 to vector<1x128xf32>
    %116 = arith.mulf %100, %115 : vector<1x128xf32>
    %117 = vector.broadcast %78 : f32 to vector<1x128xf32>
    %118 = arith.mulf %102, %117 : vector<1x128xf32>
    %119 = arith.addf %116, %118 : vector<1x128xf32>
    %120 = vector.broadcast %93 : f32 to vector<1x128xf32>
    %121 = arith.mulf %104, %120 : vector<1x128xf32>
    %122 = arith.addf %119, %121 : vector<1x128xf32>
    %123 = math.floor %122 : vector<1x128xf32>
    %124 = arith.subf %122, %123 : vector<1x128xf32>
    %125 = vector.broadcast %68 : f32 to vector<1x128xf32>
    %126 = arith.mulf %100, %125 : vector<1x128xf32>
    %127 = vector.broadcast %83 : f32 to vector<1x128xf32>
    %128 = arith.mulf %102, %127 : vector<1x128xf32>
    %129 = arith.addf %126, %128 : vector<1x128xf32>
    %130 = vector.broadcast %98 : f32 to vector<1x128xf32>
    %131 = arith.mulf %104, %130 : vector<1x128xf32>
    %132 = arith.addf %129, %131 : vector<1x128xf32>
    %133 = math.floor %132 : vector<1x128xf32>
    %134 = arith.subf %132, %133 : vector<1x128xf32>
    %135 = vector.broadcast %8 : i32 to vector<1x128xi32>
    %136 = arith.cmpi slt, %1, %135 : vector<1x128xi32>
    %137 = vector.broadcast %13 : f32 to vector<1x128xf32>
    %138 = arith.mulf %114, %137 : vector<1x128xf32>
    %139 = vector.broadcast %28 : f32 to vector<1x128xf32>
    %140 = arith.mulf %124, %139 : vector<1x128xf32>
    %141 = arith.addf %138, %140 : vector<1x128xf32>
    %142 = vector.broadcast %43 : f32 to vector<1x128xf32>
    %143 = arith.mulf %134, %142 : vector<1x128xf32>
    %144 = arith.addf %141, %143 : vector<1x128xf32>
    %cst = arith.constant 0.000000e+00 : f32
    %145 = vector.broadcast %cst : f32 to vector<1x128xf32>
    %146 = arith.select %136, %144, %145 : vector<1x128xi1>, vector<1x128xf32>
    %147 = vector.broadcast %18 : f32 to vector<1x128xf32>
    %148 = arith.mulf %114, %147 : vector<1x128xf32>
    %149 = vector.broadcast %33 : f32 to vector<1x128xf32>
    %150 = arith.mulf %124, %149 : vector<1x128xf32>
    %151 = arith.addf %148, %150 : vector<1x128xf32>
    %152 = vector.broadcast %48 : f32 to vector<1x128xf32>
    %153 = arith.mulf %134, %152 : vector<1x128xf32>
    %154 = arith.addf %151, %153 : vector<1x128xf32>
    %cst_56 = arith.constant 0.000000e+00 : f32
    %155 = vector.broadcast %cst_56 : f32 to vector<1x128xf32>
    %156 = arith.select %136, %154, %155 : vector<1x128xi1>, vector<1x128xf32>
    %157 = vector.broadcast %23 : f32 to vector<1x128xf32>
    %158 = arith.mulf %114, %157 : vector<1x128xf32>
    %159 = vector.broadcast %38 : f32 to vector<1x128xf32>
    %160 = arith.mulf %124, %159 : vector<1x128xf32>
    %161 = arith.addf %158, %160 : vector<1x128xf32>
    %162 = vector.broadcast %53 : f32 to vector<1x128xf32>
    %163 = arith.mulf %134, %162 : vector<1x128xf32>
    %164 = arith.addf %161, %163 : vector<1x128xf32>
    %cst_57 = arith.constant 0.000000e+00 : f32
    %165 = vector.broadcast %cst_57 : f32 to vector<1x128xf32>
    %166 = arith.select %136, %164, %165 : vector<1x128xi1>, vector<1x128xf32>
    %167 = tpu.concatenate %146, %156, %166 in 0 : vector<1x128xf32>, vector<1x128xf32>, vector<1x128xf32> -> vector<3x128xf32>
    %c0_58 = arith.constant 0 : index
    %c0_59 = arith.constant 0 : index
    %c0_60 = arith.constant 0 : index
    %168 = vector.load %arg5[%c0_58, %c0_59, %c0_60] : memref<1x3x128xf32, #tpu.memory_space<vmem>>, vector<1x3x128xf32>
    %169 = vector.shape_cast %168 : vector<1x3x128xf32> to vector<3x128xf32>
    %170 = vector.shape_cast %167 : vector<3x128xf32> to vector<1x3x128xf32>
    tpu.vector_store %arg5[%c0_58, %c0_59, %c0_60], %170 {strides = array<i32>} : memref<1x3x128xf32, #tpu.memory_space<vmem>>, vector<1x3x128xf32>,
    %171 = tpu.transpose %114, [1, 0] : vector<1x128xf32> -> vector<128x1xf32>
    %172 = vector.broadcast %171 : vector<128x1xf32> to vector<128x128xf32>
    %173 = vector.broadcast %114 : vector<1x128xf32> to vector<128x128xf32>
    %174 = arith.subf %172, %173 : vector<128x128xf32>
    %cst_61 = arith.constant 5.000000e-01 : f32
    %175 = vector.broadcast %cst_61 : f32 to vector<128x128xf32>
    %176 = arith.addf %174, %175 : vector<128x128xf32>
    %177 = math.floor %176 : vector<128x128xf32>
    %178 = arith.subf %174, %177 : vector<128x128xf32>
    %179 = tpu.transpose %124, [1, 0] : vector<1x128xf32> -> vector<128x1xf32>
    %180 = vector.broadcast %179 : vector<128x1xf32> to vector<128x128xf32>
    %181 = vector.broadcast %124 : vector<1x128xf32> to vector<128x128xf32>
    %182 = arith.subf %180, %181 : vector<128x128xf32>
    %cst_62 = arith.constant 5.000000e-01 : f32
    %183 = vector.broadcast %cst_62 : f32 to vector<128x128xf32>
    %184 = arith.addf %182, %183 : vector<128x128xf32>
    %185 = math.floor %184 : vector<128x128xf32>
    %186 = arith.subf %182, %185 : vector<128x128xf32>
    %187 = tpu.transpose %134, [1, 0] : vector<1x128xf32> -> vector<128x1xf32>
    %188 = vector.broadcast %187 : vector<128x1xf32> to vector<128x128xf32>
    %189 = vector.broadcast %134 : vector<1x128xf32> to vector<128x128xf32>
    %190 = arith.subf %188, %189 : vector<128x128xf32>
    %cst_63 = arith.constant 5.000000e-01 : f32
    %191 = vector.broadcast %cst_63 : f32 to vector<128x128xf32>
    %192 = arith.addf %190, %191 : vector<128x128xf32>
    %193 = math.floor %192 : vector<128x128xf32>
    %194 = arith.subf %190, %193 : vector<128x128xf32>
    %195 = vector.broadcast %13 : f32 to vector<128x128xf32>
    %196 = arith.mulf %178, %195 : vector<128x128xf32>
    %197 = vector.broadcast %28 : f32 to vector<128x128xf32>
    %198 = arith.mulf %186, %197 : vector<128x128xf32>
    %199 = arith.addf %196, %198 : vector<128x128xf32>
    %200 = vector.broadcast %43 : f32 to vector<128x128xf32>
    %201 = arith.mulf %194, %200 : vector<128x128xf32>
    %202 = arith.addf %199, %201 : vector<128x128xf32>
    %203 = arith.mulf %202, %202 : vector<128x128xf32>
    %204 = vector.broadcast %18 : f32 to vector<128x128xf32>
    %205 = arith.mulf %178, %204 : vector<128x128xf32>
    %206 = vector.broadcast %33 : f32 to vector<128x128xf32>
    %207 = arith.mulf %186, %206 : vector<128x128xf32>
    %208 = arith.addf %205, %207 : vector<128x128xf32>
    %209 = vector.broadcast %48 : f32 to vector<128x128xf32>
    %210 = arith.mulf %194, %209 : vector<128x128xf32>
    %211 = arith.addf %208, %210 : vector<128x128xf32>
    %212 = arith.mulf %211, %211 : vector<128x128xf32>
    %213 = arith.addf %203, %212 : vector<128x128xf32>
    %214 = vector.broadcast %23 : f32 to vector<128x128xf32>
    %215 = arith.mulf %178, %214 : vector<128x128xf32>
    %216 = vector.broadcast %38 : f32 to vector<128x128xf32>
    %217 = arith.mulf %186, %216 : vector<128x128xf32>
    %218 = arith.addf %215, %217 : vector<128x128xf32>
    %219 = vector.broadcast %53 : f32 to vector<128x128xf32>
    %220 = arith.mulf %194, %219 : vector<128x128xf32>
    %221 = arith.addf %218, %220 : vector<128x128xf32>
    %222 = arith.mulf %221, %221 : vector<128x128xf32>
    %223 = arith.addf %213, %222 : vector<128x128xf32>
    %224 = vector.broadcast %8 : i32 to vector<128x1xi32>
    %225 = arith.cmpi slt, %2, %224 : vector<128x1xi32>
    %226 = vector.broadcast %225 : vector<128x1xi1> to vector<128x128xi1>
    %227 = vector.broadcast %136 : vector<1x128xi1> to vector<128x128xi1>
    %228 = arith.andi %226, %227 : vector<128x128xi1>
    %cst_64 = arith.constant 9.000000e+00 : f32
    %229 = vector.broadcast %cst_64 : f32 to vector<128x128xf32>
    %230 = arith.cmpf ole, %223, %229 : vector<128x128xf32>
    %231 = arith.andi %230, %5 : vector<128x128xi1>
    %232 = arith.andi %231, %228 : vector<128x128xi1>
    %233 = arith.extui %232 : vector<128x128xi1> to vector<128x128xi8>
    %c0_65 = arith.constant 0 : index
    %c0_66 = arith.constant 0 : index
    %c0_67 = arith.constant 0 : index
    %234 = vector.load %arg7[%c0_65, %c0_66, %c0_67] : memref<1x128x128xi8, #tpu.memory_space<vmem>>, vector<1x128x128xi8>
    %235 = vector.shape_cast %234 : vector<1x128x128xi8> to vector<128x128xi8>
    %236 = vector.shape_cast %233 : vector<128x128xi8> to vector<1x128x128xi8>
    tpu.vector_store %arg7[%c0_65, %c0_66, %c0_67], %236 {strides = array<i32>} : memref<1x128x128xi8, #tpu.memory_space<vmem>>, vector<1x128x128xi8>,
    %237 = math.sqrt %223 : vector<128x128xf32>
    %cst_68 = arith.constant 0.000000e+00 : f32
    %238 = vector.broadcast %cst_68 : f32 to vector<128x128xf32>
    %239 = arith.select %228, %237, %238 : vector<128x128xi1>, vector<128x128xf32>
    %240 = arith.truncf %239 : vector<128x128xf32> to vector<128x128xbf16>
    %c0_69 = arith.constant 0 : index
    %c0_70 = arith.constant 0 : index
    %c0_71 = arith.constant 0 : index
    %241 = vector.load %arg6[%c0_69, %c0_70, %c0_71] : memref<1x128x128xbf16, #tpu.memory_space<vmem>>, vector<1x128x128xbf16>
    %242 = vector.shape_cast %241 : vector<1x128x128xbf16> to vector<128x128xbf16>
    %243 = vector.shape_cast %240 : vector<128x128xbf16> to vector<1x128x128xbf16>
    tpu.vector_store %arg6[%c0_69, %c0_70, %c0_71], %243 {strides = array<i32>} : memref<1x128x128xbf16, #tpu.memory_space<vmem>>, vector<1x128x128xbf16>,
    return
  }
  func.func @transform_0(%arg0: i32, %arg1: memref<2xi32, #tpu.memory_space<smem>>) -> i32 {
    %c0_i32 = arith.constant 0 : i32
    %c0_i32_0 = arith.constant 0 : i32
    return %c0_i32 : i32
  }
  func.func @transform_1(%arg0: i32, %arg1: memref<2xi32, #tpu.memory_space<smem>>) -> i32 {
    %c0_i32 = arith.constant 0 : i32
    %c0_i32_0 = arith.constant 0 : i32
    return %c0_i32 : i32
  }
  func.func @transform_2(%arg0: i32, %arg1: memref<2xi32, #tpu.memory_space<smem>>) -> (i32, i32, i32) {
    %c0_i32 = arith.constant 0 : i32
    %c0_i32_0 = arith.constant 0 : i32
    %c0_i32_1 = arith.constant 0 : i32
    return %arg0, %c0_i32, %c0_i32_0 : i32, i32, i32
  }
  func.func @transform_3(%arg0: i32, %arg1: memref<2xi32, #tpu.memory_space<smem>>) -> (i32, i32, i32) {
    %c0_i32 = arith.constant 0 : i32
    %c0_i32_0 = arith.constant 0 : i32
    %c0_i32_1 = arith.constant 0 : i32
    return %arg0, %c0_i32, %c0_i32_0 : i32, i32, i32
  }
  func.func @transform_4(%arg0: i32, %arg1: memref<2xi32, #tpu.memory_space<smem>>) -> (i32, i32, i32) {
    %c0_i32 = arith.constant 0 : i32
    %c0_i32_0 = arith.constant 0 : i32
    %c0_i32_1 = arith.constant 0 : i32
    return %arg0, %c0_i32, %c0_i32_0 : i32, i32, i32
  }
  func.func @transform_5(%arg0: i32, %arg1: memref<2xi32, #tpu.memory_space<smem>>) -> (i32, i32, i32) {
    %c0_i32 = arith.constant 0 : i32
    %c0_i32_0 = arith.constant 0 : i32
    %c0_i32_1 = arith.constant 0 : i32
    return %arg0, %c0_i32, %c0_i32_0 : i32, i32, i32
  }
}

</mosaic_0001>

<bundles_post_ra>
// kernel: tpu_custom_call.1
= control target key start
LH: loop header
LB: loop body
LE: loop exit
PB: predicated region body
PF: predicated region fallthrough
CT: control target
= control target key end

     0   :  { %s2162_s24 = smov [#allocation3]   ;;  %s3869_s0 = inlined_call_operand.vmem [shape: s32[2], index: 0, kind: input, shape index: {}]   ;;  %s3870_s1 = inlined_call_operand.vmem [shape: f32[18], index: 1, kind: input, shape index: {}]   ;;  %s3871_s2 = inlined_call_operand.vmem [shape: f32[18], index: 2, kind: input, shape index: {}]   ;;  %s3872_s3 = inlined_call_operand.vmem [shape: f32[2,3,128], index: 3, kind: input, shape index: {}]   ;;  %s3873_s4 = inlined_call_operand.vmem [shape: f32[2,3,128], index: 4, kind: output, shape index: {0}]   ;;  %s3874_s5 = inlined_call_operand.hbm [shape: bf16[2,128,128], index: 5, kind: output, shape index: {1}]   ;;  %s3875_s6 = inlined_call_operand.hbm [shape: s8[2,128,128], index: 6, kind: output, shape index: {2}]  }
   0x1   :  { %3962 = sst [smem:[#allocation60_spill]] %s3870_s1  ;;  %s13_s23 = sshll.u32 %s3869_s0, 4  ;;  %s14_s23 = int_to_ptr.vmem [resolvable:$true] %s13_s23 }
   0x2   :  { %16 = dma.vmem_to_smem %s14_s23, 16, %s2162_s24, [#allocation2] }
   0x3   :  { %2128 = dma.done.wait [#allocation2], 16 }
   0x4   :  { %2129 = vsyncadd [#allocation2], 4294967280 }
   0x5   :  { %19 = sfence }
   0x6   :  { %20 = vsyncpa [#allocation6], 0 }
   0x7   :  { %21 = vsyncpa [#allocation8], 0 }
   0x8   :  { %22 = vsyncpa [#allocation5], 0 }
   0x9   :  { %24 = vsyncpa [#allocation5 + $0x1], 0 }
   0xa   :  { %25 = vsyncpa [#allocation11], 0 }
   0xb   :  { %27 = vsyncpa [#allocation11 + $0x1], 0  ;;  %s2208_s25 = smov 0   ;;  %s2210_s26 = smov 0  }
   0xc   :  { %s2212_s27 = smov 0   ;;  %s2214_s28 = smov 0  }
   0xd LB: > { %s2229_s0 = sadd.s32 4294967295, %s2160_s28   ;;  %s1838_s29 = sadd.s32 4294967294, %s2160_s28   ;;  %s2160_s28 = sphi %s2214_s28, %s4255_s28   ;;  %s2156_s27 = sphi %s2212_s27, %s4254_s27   ;;  %s2152_s26 = sphi %s2210_s26, %s4253_s26   ;;  %s2148_s25 = sphi %s2208_s25, %s4252_s25  }
   0xe   : > { %s2233_s30 = sadd.s32 1, %s2160_s28   ;;  %s134_s7 = sadd.s32 1, %s2156_s27 }
   0xf   : > { %s131_s8 = ssub.s32 %s2160_s28, %s2233_s30  ;;  %p144_p0 = scmp.ne.s32.totalorder %s2156_s27, %s2152_s26 }
  0x10   : > { %p132_p1 = scmp.eq.s32.totalorder %s131_s8, 0  ;;  %p145_p2 = scmp.eq.s32.totalorder %s2229_s0, 1 }
  0x11   : > { %p150_p3 = scmp.ne.s32.totalorder %s2152_s26, %s2148_s25  ;;  %p151_p4 = scmp.eq.s32.totalorder %s1838_s29, 1 }
  0x12   : > { %s2244_s9 = scalar_select %p132_p1, %s2156_s27, %s134_s7  }
  0x13   : > { %p2246_p5 = por %p145_p2, %p144_p0  ;;  %p2250_p6 = por %p151_p4, %p150_p3 }
  0x14   : > { %p1839_p7 = scmp.ge.s32.totalorder %s2160_s28, 1  ;;  %p184_p8 = scmp.lt.s32.totalorder %s2160_s28, 3 }
  0x15   : > { %p1933_p9 = scmp.eq.s32.totalorder %s2229_s0, 0  ;;  %s3965_s1 = sld [smem:[#allocation60_spill]] }
  0x16   : > { %p185_p10 = pnand %p1839_p7, %p184_p8  ;;  %s206_s17 = sshll.u32 %s3871_s2, 4  ;;  %s207_s17 = int_to_ptr.vmem [resolvable:$true] %s206_s17 }
  0x17   : > { %s2163_s18 = smov [#allocation4]   ;;  %s2164_s19 = smov [#allocation7]  }
  0x18   : > { %p1919_p11 = pneg %p185_p10 }
  0x19   : > { %226 = sbr.rel (%p185_p10) target bundleno = 685 (0x2ad), region = 32 }
  0x1a   : > { %p1920_p12 = pnand %p1933_p9, %p1919_p11 }
  0x1b   : > { %s196_s14 = sshll.u32 %s3965_s1, 4  ;;  %s197_s14 = int_to_ptr.vmem [resolvable:$true] %s196_s14 }
  0x1c   : > { %1922 = dma.vmem_to_smem (!%p1920_p12), %s197_s14, 16, %s2163_s18, [#allocation6]  }
  0x1d   : > { %1925 = dma.vmem_to_smem (!%p1920_p12), %s207_s17, 16, %s2164_s19, [#allocation8]  }
  0x1e   : > { %2131 = dma.done.wait (%p1933_p9), [#allocation6], 16  }
  0x1f   : > { %2133 = vsyncadd (%p1933_p9), [#allocation6], 4294967280 }
  0x20   : > { %2135 = dma.done.wait (%p1933_p9), [#allocation8], 16  }
  0x21   : > { %2137 = vsyncadd (%p1933_p9), [#allocation8], 4294967280 }
  0x22   : > { %238 = sfence }
  0x23   : > { %p269_p13 = scmp.lt.s32.totalorder %s2229_s0, 1  ;;  %s2275_s20 = smul.u32 9, %s2229_s0  ;;  %v3884_v31 = vlaneseq  ;;  %v3974_v60 = vmov 0  ;;  %vm410_vm1 = vcmask 1040384   ;;  %vm412_vm2 = vcmask 1041408  }
  0x25   : > { %s2278_s21 = scalar_select %p269_p13, %s2229_s0, 1  ;;  %v2369_v52 = vand.u32 127, %v3884_v31 }
  0x26   : > { %s3879_s22 = sadd.s32 2, %s2275_s20  ;;  %s3878_s24 = sadd.s32 5, %s2275_s20 }
  0x27   : > { %s3876_s23 = sshll.u32 %s2278_s21, 2  ;;  %s3877_s29 = sadd.s32 8, %s2275_s20  ;;  %3972 = vst [vmem:[#allocation18_spill] sm:$0xff] %v2369_v52 }
  0x28   : > { %s335_s7 = sld [smem:[#allocation7 + %s3879_s22]]  ;;  %s272_s13 = scalar_lea.vmem %s3872_s3, %s3876_s23 }
  0x29   : > { %s338_s14 = sld [smem:[#allocation7 + %s3878_s24]]  ;;  %s3880_s16 = sadd.s32 1, %s2275_s20  ;;  %v342_v0 = vld [vmem:[%s272_s13] sm:$0x1]  ;;  %v343_v1 = vld [vmem:[%s272_s13 + $0x1] sm:$0x1] }
  0x2a   : > { %s341_s15 = sld [smem:[#allocation7 + %s3877_s29]]  ;;  %s3881_s17 = sadd.s32 4, %s2275_s20  ;;  %v344_v2 = vld [vmem:[%s272_s13 + $0x2] sm:$0x1] }
  0x2b   : > { %s329_s18 = sadd.s32 7, %s2275_s20  ;;  %s334_s19 = sld [smem:[#allocation7 + %s3880_s16]] }
  0x2c   : > { %s337_s8 = sld [smem:[#allocation7 + %s3881_s17]]  ;;  %s321_s12 = sadd.s32 3, %s2275_s20 }
  0x2d   : > { %s340_s23 = sld [smem:[#allocation7 + %s329_s18]]  ;;  %s327_s29 = sadd.s32 6, %s2275_s20 }
  0x2e   : > { %v365_v3 = vstv %s335_s7  ;;  %s333_s24 = sld [smem:[#allocation7 + %s2275_s20]]  ;;  %s3966_s13 = sadd.s32 2, %s2275_s20 }
  0x2f   : > { %v366_v4 = vmul.f32 %v365_v3, %v342_v0  ;;  %v367_v5 = vstv %s338_s14  ;;  %s336_s22 = sld [smem:[#allocation7 + %s321_s12]]  ;;  %s3967_s14 = sadd.s32 5, %s2275_s20 }
  0x30   : > { %v368_v6 = vmul.f32 %v367_v5, %v343_v1  ;;  %v370_v7 = vstv %s341_s15  ;;  %s339_s7 = sld [smem:[#allocation7 + %s327_s29]] }
  0x31   : > { %v371_v8 = vmul.f32 %v370_v7, %v344_v2  ;;  %v355_v11 = vstv %s334_s19  ;;  %s2307_s16 = sld [smem:[#allocation4 + %s3966_s13]]  ;;  %s3968_s19 = sadd.s32 8, %s2275_s20 }
  0x32   : > { %v369_v9 = vadd.f32 %v368_v6, %v366_v4  ;;  %v356_v12 = vmul.f32 %v355_v11, %v342_v0  ;;  %v357_v13 = vstv %s337_s8  ;;  %s2311_s17 = sld [smem:[#allocation4 + %s3967_s14]]  ;;  %s3969_s14 = sadd.s32 4, %s2275_s20  ;;  %v3882_v11 = vmov 0  }
  0x33   : > { %v358_v15 = vmul.f32 %v357_v13, %v343_v1  ;;  %v360_v16 = vstv %s340_s23  ;;  %s328_s15 = sld [smem:[#allocation4 + %s327_s29]]  ;;  %s3970_s29 = sadd.s32 1, %s2275_s20 }
  0x34   : > { %v372_v10 = vadd.f32 %v371_v8, %v369_v9  ;;  %v361_v17 = vmul.f32 %v360_v16, %v344_v2  ;;  %s330_s1 = sld [smem:[#allocation4 + %s329_s18]]  ;;  %v345_v20 = vstv %s333_s24 }
  0x35   : > { %v359_v19 = vadd.f32 %v358_v15, %v356_v12  ;;  %s332_s13 = sld [smem:[#allocation4 + %s3968_s19]]  ;;  %v346_v21 = vmul.f32 %v345_v20, %v342_v0  ;;  %v347_v22 = vstv %s336_s22 }
  0x36   : > { %v373_v14 = vfloor.f32 %v372_v10  ;;  %s322_s8 = sld [smem:[#allocation4 + %s321_s12]]  ;;  %v348_v24 = vmul.f32 %v347_v22, %v343_v1  ;;  %v350_v25 = vstv %s339_s7 }
  0x37   : > { %s324_s23 = sld [smem:[#allocation4 + %s3969_s14]]  ;;  %v362_v23 = vadd.f32 %v361_v17, %v359_v19  ;;  %v351_v26 = vmul.f32 %v350_v25, %v344_v2  ;;  %v2330_v33 = vstv %s2307_s16 }
  0x38   : > { %v2313_v18 = vsub.f32 %v372_v10, %v373_v14  ;;  %s318_s18 = sld [smem:[#allocation4 + %s3970_s29]]  ;;  %v349_v28 = vadd.f32 %v348_v24, %v346_v21  ;;  %v2333_v34 = vstv %s2311_s17 }
  0x39   : > { %v363_v27 = vfloor.f32 %v362_v23  ;;  %s316_s24 = sld [smem:[#allocation4 + %s2275_s20]]  ;;  %v2327_v32 = vstv %s328_s15  ;;  %s1858_s15 = sshll.u32 %s2229_s0, 6 }
  0x3a   : > { %769 = vxpose.xlu1.b32.start.end [1/1] (short) %v2313_v18, 128  ;;  %v352_v30 = vadd.f32 %v351_v26, %v349_v28  ;;  %s314_s22 = sld [smem:[#allocation3 + %s2229_s0]]  ;;  %3971 = vst [vmem:[#allocation17_spill] sm:$0xff] %v2327_v32  ;;  %v2335_v36 = vstv %s330_s1  ;;  %v383_v44 = vmul.f32 %v2327_v32, %v2313_v18  ;;  %s3977_s1 = sshll.u32 %s2278_s21, 2 }
  0x3b   : > { %v2323_v29 = vsub.f32 %v362_v23, %v363_v27  ;;  %v2337_v37 = vstv %s332_s13  ;;  %v392_v45 = vmul.f32 %v2335_v36, %v2313_v18  ;;  %s276_s17 = scalar_lea.vmem %s3873_s4, %s3977_s1  ;;  %s3099_s21 = sand.u32 1, %s2152_s26  }
  0x3c   : > { %v353_v35 = vfloor.f32 %v352_v30  ;;  %v2339_v38 = vstv %s322_s8  ;;  %v401_v48 = vmul.f32 %v2337_v37, %v2313_v18  ;;  %s1846_s12 = sshll.u32 %s3099_s21, 6  ;;  %s3500_s8 = scalar_lea.hbm %s3874_s5, %s1858_s15 }
  0x3d   : > { %592 = vxpose.xlu2.b32.start.end [1/1] (short) %v2323_v29, 128  ;;  %v2341_v39 = vstv %s324_s23  ;;  %v380_v40 = vmul.f32 %v2339_v38, %v2323_v29  ;;  %v398_v42 = vmul.f32 %v2333_v34, %v2323_v29  ;;  %s3166_s7 = scalar_lea.vmem [#allocation9], %s1846_s12  ;;  %s1679_s23 = sshll.u32 %s3500_s8, 4  ;;  %s3627_s23 = int_to_ptr.hbm [resolvable:$true] %s1679_s23 }
  0x3e   : > { %v389_v41 = vmul.f32 %v2341_v39, %v2323_v29  ;;  %v2349_v43 = vsub.f32 %v352_v30, %v353_v35  ;;  %v2355_v46 = vstv %s318_s18  ;;  %s1677_s14 = sshll.u32 %s3166_s7, 4  ;;  %s1657_s29 = scalar_lea.sflag [#allocation5], %s3099_s21  ;;  %s3625_s14 = int_to_ptr.vmem [resolvable:$true] %s1677_s14 }
  0x3f   : > { %v2357_v47 = vstv %s316_s24  ;;  %s2070_s18 = sshra.s32 %s3627_s23, 4  ;;  %s2076_s20 = scalar_lea.hbm %s3874_s5, 128  ;;  %s2071_s18 = int_to_ptr.hbm [resolvable:$true] %s2070_s18 }
  0x40   : > { %415 = vxpose.xlu0.b32.start.end [1/1] (short) %v2349_v43, 128  ;;  %v378_v49 = vmul.f32 %v2357_v47, %v2349_v43  ;;  %v387_v50 = vmul.f32 %v2355_v46, %v2349_v43  ;;  %v396_v51 = vmul.f32 %v2330_v33, %v2349_v43  ;;  %v2371_v53 = vstv %s314_s22  ;;  %s2072_s24 = scalar_lea.hbm %s2071_s18, 64  ;;  %p2077_p3 = scmp.lt.s32.totalorder %s2071_s18, %s3874_s5 }
  0x41   : > { %3973 = vst [vmem:[#allocation19_spill] sm:$0xff] %v2371_v53  ;;  %vm2375_vm0 = vcmp.lt.s32.totalorder %v2369_v52, %v2371_v53  ;;  %p2073_p0 = scmp.ne.s32.totalorder %s2071_s18, %s2072_s24  ;;  %p2078_p4 = scmp.lt.s32.totalorder %s2076_s20, %s2072_s24 }
  0x42   : > { %v381_v54 = vadd.f32 %v380_v40, %v378_v49  ;;  %v390_v55 = vadd.f32 %v389_v41, %v387_v50  ;;  %v399_v56 = vadd.f32 %v398_v42, %v396_v51  ;;  %v3975_v60 = vsel %vm2375_vm0, 4294967295, %v3974_v60 }
  0x43   : > { %3976 = vst [vmem:[#allocation20_spill] sm:$0xff] %v3975_v60  ;;  %p2074_p1 = pnand %p2073_p0, %p2246_p5  ;;  %p2079_p7 = por %p2078_p4, %p2077_p3 }
  0x44   : > { %v384_v57 = vadd.f32 %v383_v44, %v381_v54  ;;  %v393_v58 = vadd.f32 %v392_v45, %v390_v55  ;;  %v402_v59 = vadd.f32 %v401_v48, %v399_v56 }
  0x45   : > { %p2075_p2 = pneg %p2074_p1 }
  0x46   : > { %v385_v61 = vsel %vm2375_vm0, %v384_v57, 0.0  ;;  %v394_v62 = vsel %vm2375_vm0, %v393_v58, 0.0  ;;  %v403_v63 = vsel %vm2375_vm0, %v402_v59, 0.0 }
  0x47   : > { %v405_v0 = vrot.slane %v394_v62, 7  ;;  %v408_v1 = vrot.slane %v403_v63, 6  ;;  %p2080_p8 = pnand %p2079_p7, %p2075_p2 }
  0x49   : > { %v411_v2 = vsel %vm410_vm1, %v385_v61, %v405_v0 }
  0x4a   : > { %v413_v3 = vsel %vm412_vm2, %v411_v2, %v408_v1 }
  0x4b   : > { %414 = vst [vmem:[%s276_s17] sm:$0x7] %v413_v3 }
  0x8d   : > { %1981 = vset.pattern.permute.xlu1 %v3882_v11 }
  0x9f   : > { %1980 = vset.pattern.permute.xlu2 %v3882_v11 }
  0xa7   : > { %1979 = vset.pattern.permute.xlu0 %v3882_v11 }
  0xd6   : > { %v2390_v4 = vpop.trf.xlu2 }
  0xde   : > { %v2392_v5 = vpop.trf.xlu1  ;;  %v2394_v6 = vpop.trf.xlu2 }
  0xe4   : > { %v431_v7 = vpop.trf.xlu0 }
  0xe6   : > { %v786_v8 = vpop.trf.xlu1  ;;  %v2396_v9 = vpop.trf.xlu2 }
  0xec   : > { %v432_v10 = vpop.trf.xlu0 }
  0xee   : > { %v787_v12 = vpop.trf.xlu1  ;;  %v2401_v14 = vpop.trf.xlu2 }
  0xf4   : > { %v433_v13 = vpop.trf.xlu0 }
  0xf6   : > { %v788_v15 = vpop.trf.xlu1  ;;  %v612_v17 = vpop.trf.xlu2 }
  0xfc   : > { %v434_v16 = vpop.trf.xlu0 }
  0xfe   : > { %v789_v19 = vpop.trf.xlu1  ;;  %v613_v21 = vpop.trf.xlu2 }
 0x104   : > { %v435_v20 = vpop.trf.xlu0 }
 0x106   : > { %v790_v22 = vpop.trf.xlu1  ;;  %v2403_v24 = vpop.trf.xlu2 }
 0x10c   : > { %454 = vperm.xlu1 %1981, %v432_v10   ;;  %v436_v23 = vpop.trf.xlu0 }
 0x10e   : > { %v791_v26 = vpop.trf.xlu1  ;;  %v2405_v28 = vpop.trf.xlu2 }
 0x114   : > { %459 = vperm.xlu1 %1981, %v433_v13   ;;  %v437_v25 = vpop.trf.xlu0 }
 0x116   : > { %v792_v30 = vpop.trf.xlu1  ;;  %v616_v40 = vpop.trf.xlu2 }
 0x11c   : > { %474 = vperm.xlu1 %1981, %v436_v23   ;;  %v438_v27 = vpop.trf.xlu0 }
 0x11e   : > { %464 = vperm.xlu2 %1980, %v434_v16   ;;  %v793_v41 = vpop.trf.xlu1  ;;  %v617_v44 = vpop.trf.xlu2 }
 0x124   : > { %484 = vperm.xlu1 %1981, %v438_v27   ;;  %v439_v35 = vpop.trf.xlu0 }
 0x126   : > { %469 = vperm.xlu2 %1980, %v435_v20   ;;  %449 = vperm.xlu0 %1979, %v431_v7   ;;  %v794_v45 = vpop.trf.xlu1  ;;  %v2407_v49 = vpop.trf.xlu2 }
 0x12c   : > { %v440_v42 = vpop.trf.xlu0 }
 0x12d   : > { %494 = vperm.xlu1 %1981, %v440_v42  }
 0x12e   : > { %479 = vperm.xlu2 %1980, %v437_v25   ;;  %808 = vperm.xlu0 %1979, %v786_v8   ;;  %v795_v51 = vpop.trf.xlu1  ;;  %v2409_v55 = vpop.trf.xlu2 }
 0x134   : > { %v441_v48 = vpop.trf.xlu0 }
 0x136   : > { %489 = vperm.xlu2 %1980, %v439_v35   ;;  %813 = vperm.xlu0 %1979, %v787_v12   ;;  %v796_v56 = vpop.trf.xlu1  ;;  %v2411_v58 = vpop.trf.xlu2 }
 0x13c   : > { %v442_v50 = vpop.trf.xlu0 }
 0x13d   : > { %504 = vperm.xlu1 %1981, %v442_v50  }
 0x13e   : > { %499 = vperm.xlu2 %1980, %v441_v48   ;;  %818 = vperm.xlu0 %1979, %v788_v15   ;;  %v797_v59 = vpop.trf.xlu1  ;;  %v2414_v62 = vpop.trf.xlu2 }
 0x144   : > { %v443_v54 = vpop.trf.xlu0 }
 0x146   : > { %509 = vperm.xlu2 %1980, %v443_v54   ;;  %823 = vperm.xlu0 %1979, %v789_v19   ;;  %v798_v63 = vpop.trf.xlu1  ;;  %v2417_v0 = vpop.trf.xlu2 }
 0x14c   : > { %v444_v57 = vpop.trf.xlu0 }
 0x14d   : > { %514 = vperm.xlu1 %1981, %v444_v57  }
 0x14e   : > { %828 = vperm.xlu0 %1979, %v790_v22   ;;  %v799_v1 = vpop.trf.xlu1  ;;  %v2420_v2 = vpop.trf.xlu2  ;;  %v2442_v22 = vperm.slane %v2313_v18, 0 }
 0x154   : > { %v445_v61 = vpop.trf.xlu0 }
 0x155   : > { %626 = vperm.xlu1 %1981, %v2390_v4   ;;  %519 = vperm.xlu2 %1980, %v445_v61  }
 0x156   : > { %833 = vperm.xlu0 %1979, %v791_v26   ;;  %v800_v3 = vpop.trf.xlu1 }
 0x15d   : > { %631 = vperm.xlu1 %1981, %v2394_v6   ;;  %646 = vperm.xlu2 %1980, %v612_v17   ;;  %v2424_v6 = vperm.slane %v2349_v43, 0  ;;  %v446_v43 = vpop.trf.xlu0 }
 0x15e   : > { %838 = vperm.xlu0 %1979, %v792_v30  }
 0x15f   : > { %3978 = vst [vmem:[#allocation21_spill] sm:$0xff] %v2424_v6 }
 0x165   : > { %636 = vperm.xlu1 %1981, %v2396_v9   ;;  %863 = vperm.xlu2 %1980, %v797_v59  }
 0x166   : > { %843 = vperm.xlu0 %1979, %v793_v41  }
 0x16d   : > { %641 = vperm.xlu1 %1981, %v2401_v14   ;;  %873 = vperm.xlu2 %1980, %v799_v1  }
 0x16e   : > { %848 = vperm.xlu0 %1979, %v794_v45  }
 0x175   : > { %651 = vperm.xlu1 %1981, %v613_v21  }
 0x176   : > { %853 = vperm.xlu0 %1979, %v795_v51   ;;  %v2466_v51 = vperm.slane %v2323_v29, 0 }
 0x178   : > { %v465_v4 = vpop.permute.xlu2 %464 }
 0x179   : > { %v531_v35 = vsub.f32 %v465_v4, %v2424_v6 }
 0x17b   : > { %v547_v18 = vadd.f32 0.5, %v531_v35 }
 0x17d   : > { %656 = vperm.xlu1 %1981, %v2403_v24  }
 0x17e   : > { %v455_v7 = vpop.permute.xlu1 %454  ;;  %858 = vperm.xlu0 %1979, %v796_v56  }
 0x17f   : > { %v529_v8 = vsub.f32 %v455_v7, %v2424_v6 }
 0x180   : > { %v470_v9 = vpop.permute.xlu2 %469 }
 0x185   : > { %661 = vperm.xlu1 %1981, %v2405_v28  }
 0x186   : > { %v460_v10 = vpop.permute.xlu1 %459  ;;  %868 = vperm.xlu0 %1979, %v798_v63  }
 0x187   : > { %v2429_v12 = vsub.f32 %v460_v10, %v2424_v6 }
 0x188   : > { %v480_v14 = vpop.permute.xlu2 %479 }
 0x189   : > { %v546_v59 = vadd.f32 0.5, %v2429_v12 }
 0x18d   : > { %666 = vperm.xlu1 %1981, %v616_v40   ;;  %v532_v40 = vsub.f32 %v470_v9, %v2424_v6 }
 0x18e   : > { %v475_v13 = vpop.permute.xlu1 %474  ;;  %878 = vperm.xlu0 %1979, %v800_v3  }
 0x18f   : > { %v2433_v15 = vsub.f32 %v475_v13, %v2424_v6  ;;  %v548_v50 = vadd.f32 0.5, %v532_v40 }
 0x190   : > { %v490_v19 = vpop.permute.xlu2 %489 }
 0x191   : > { %v564_v57 = vfloor.f32 %v548_v50 }
 0x193   : > { %v580_v29 = vsub.f32 %v532_v40, %v564_v57 }
 0x195   : > { %671 = vperm.xlu1 %1981, %v617_v44   ;;  %v545_v44 = vadd.f32 0.5, %v529_v8  ;;  %v1158_v50 = vmul.f32 %v580_v29, %v2330_v33 }
 0x196   : > { %v485_v16 = vpop.permute.xlu1 %484 }
 0x197   : > { %v2436_v17 = vsub.f32 %v485_v16, %v2424_v6  ;;  %v561_v54 = vfloor.f32 %v545_v44 }
 0x198   : > { %v450_v20 = vpop.permute.xlu0 %449  ;;  %v500_v23 = vpop.permute.xlu2 %499 }
 0x199   : > { %v2439_v21 = vsub.f32 %v450_v20, %v2424_v6  ;;  %v577_v63 = vsub.f32 %v529_v8, %v561_v54  ;;  %v536_v8 = vsub.f32 %v490_v19, %v2424_v6  ;;  %v538_v40 = vsub.f32 %v500_v23, %v2424_v6 }
 0x19a   : > { %v950_v19 = vmul.f32 %v580_v29, %v2357_v47  ;;  %v551_v57 = vadd.f32 0.5, %v2436_v17 }
 0x19b   : > { %v2487_v16 = vmul.f32 %v577_v63, %v2355_v46  ;;  %v544_v11 = vadd.f32 0.5, %v2439_v21 }
 0x19d   : > { %524 = vperm.xlu1 %1981, %v446_v43   ;;  %v2484_v43 = vmul.f32 %v577_v63, %v2357_v47 }
 0x19f   : > { %v495_v24 = vpop.permute.xlu1 %494 }
 0x1a0   : > { %v809_v25 = vpop.permute.xlu0 %808  ;;  %v2445_v26 = vsub.f32 %v495_v24, %v2424_v6  ;;  %v2451_v28 = vpop.permute.xlu2 %509 }
 0x1a1   : > { %v2448_v27 = vsub.f32 %v809_v25, %v2442_v22  ;;  %v2490_v25 = vmul.f32 %v577_v63, %v2330_v33 }
 0x1a5   : > { %676 = vperm.xlu1 %1981, %v2407_v49   ;;  %v563_v49 = vfloor.f32 %v547_v18  ;;  %v549_v18 = vadd.f32 0.5, %v2433_v15 }
 0x1a7   : > { %v579_v56 = vsub.f32 %v531_v35, %v563_v49 }
 0x1a8   : > { %v2453_v30 = vpop.permute.xlu0 %813 }
 0x1a9   : > { %v2473_v7 = vmul.f32 %v579_v56, %v2357_v47  ;;  %v2477_v13 = vmul.f32 %v579_v56, %v2355_v46 }
 0x1ad   : > { %681 = vperm.xlu1 %1981, %v2409_v55   ;;  %v534_v55 = vsub.f32 %v480_v14, %v2424_v6  ;;  %v562_v14 = vfloor.f32 %v546_v59 }
 0x1af   : > { %v505_v41 = vpop.permute.xlu1 %504  ;;  %v2458_v42 = vpop.permute.xlu2 %519  ;;  %v550_v4 = vadd.f32 0.5, %v534_v55  ;;  %v578_v54 = vsub.f32 %v2429_v12, %v562_v14 }
 0x1b0   : > { %v2461_v45 = vsub.f32 %v505_v41, %v2424_v6  ;;  %v2463_v48 = vpop.permute.xlu0 %818  ;;  %v1046_v41 = vmul.f32 %v580_v29, %v2355_v46 }
 0x1b1   : > { %v566_v35 = vfloor.f32 %v550_v4  ;;  %v565_v4 = vfloor.f32 %v549_v18  ;;  %v567_v18 = vfloor.f32 %v551_v57 }
 0x1b2   : > { %v555_v60 = vadd.f32 0.5, %v2461_v45 }
 0x1b5   : > { %686 = vperm.xlu1 %1981, %v2411_v58   ;;  %v2480_v58 = vmul.f32 %v579_v56, %v2330_v33  ;;  %v552_v56 = vadd.f32 0.5, %v536_v8 }
 0x1b7   : > { %v647_v61 = vpop.permute.xlu2 %646 }
 0x1b8   : > { %v709_v1 = vsub.f32 %v647_v61, %v2466_v51  ;;  %v824_v3 = vpop.permute.xlu0 %823 }
 0x1b9   : > { %v886_v10 = vsub.f32 %v824_v3, %v2442_v22  ;;  %v582_v3 = vsub.f32 %v534_v55, %v566_v35  ;;  %v568_v35 = vfloor.f32 %v552_v56  ;;  %v581_v56 = vsub.f32 %v2433_v15, %v565_v4 }
 0x1ba   : > { %v725_v9 = vadd.f32 0.5, %v709_v1  ;;  %v553_v15 = vadd.f32 0.5, %v2445_v26 }
 0x1bb   : > { %v902_v24 = vadd.f32 0.5, %v886_v10 }
 0x1bc   : > { %v741_v20 = vfloor.f32 %v725_v9  ;;  %v554_v9 = vadd.f32 0.5, %v538_v40 }
 0x1bd   : > { %691 = vperm.xlu1 %1981, %v2414_v62   ;;  %v918_v49 = vfloor.f32 %v902_v24  ;;  %v2508_v24 = vmul.f32 %v578_v54, %v2357_v47 }
 0x1be   : > { %v757_v44 = vsub.f32 %v709_v1, %v741_v20  ;;  %v570_v57 = vfloor.f32 %v554_v9 }
 0x1bf   : > { %v515_v59 = vpop.permute.xlu1 %514  ;;  %v934_v63 = vsub.f32 %v886_v10, %v918_v49  ;;  %v2521_v49 = vmul.f32 %v578_v54, %v2330_v33 }
 0x1c0   : > { %v966_v61 = vmul.f32 %v757_v44, %v2339_v38  ;;  %v1062_v23 = vmul.f32 %v757_v44, %v2341_v39  ;;  %v1174_v62 = vmul.f32 %v757_v44, %v2333_v34  ;;  %v2504_v1 = vsub.f32 %v515_v59, %v2424_v6  ;;  %v2513_v55 = vpop.permute.xlu0 %828 }
 0x1c1   : > { %v998_v14 = vmul.f32 %v934_v63, %v2327_v32  ;;  %v1094_v31 = vmul.f32 %v934_v63, %v2335_v36  ;;  %v1206_v10 = vmul.f32 %v934_v63, %v2337_v37  ;;  %v2518_v44 = vmul.f32 %v578_v54, %v2355_v46 }
 0x1c2   : > { %v982_v29 = vadd.f32 %v966_v61, %v950_v19  ;;  %v1078_v20 = vadd.f32 %v1062_v23, %v1046_v41  ;;  %v1190_v12 = vadd.f32 %v1174_v62, %v1158_v50  ;;  %v540_v19 = vsub.f32 %v2451_v28, %v2424_v6 }
 0x1c3   : > { %v2525_v61 = vmul.f32 %v582_v3, %v2357_v47  ;;  %v2529_v28 = vmul.f32 %v582_v3, %v2355_v46  ;;  %v2532_v62 = vmul.f32 %v582_v3, %v2330_v33  ;;  %v560_v63 = vfloor.f32 %v544_v11 }
 0x1c4   : > { %v1014_v41 = vadd.f32 %v998_v14, %v982_v29  ;;  %v1110_v50 = vadd.f32 %v1094_v31, %v1078_v20  ;;  %v1222_v59 = vadd.f32 %v1206_v10, %v1190_v12  ;;  %v584_v31 = vsub.f32 %v536_v8, %v568_v35 }
 0x1c5   : > { %696 = vperm.xlu1 %1981, %v2417_v0   ;;  %v583_v20 = vsub.f32 %v2436_v17, %v567_v18  ;;  %v556_v0 = vadd.f32 0.5, %v540_v19  ;;  %v899_v14 = vadd.f32 0.5, %v2448_v27  ;;  %v2539_v10 = vmul.f32 %v581_v56, %v2357_v47 }
 0x1c6   : > { %v1030_v23 = vmul.f32 %v1014_v41, %v1014_v41  ;;  %v1126_v54 = vmul.f32 %v1110_v50, %v1110_v50  ;;  %v1238_v9 = vmul.f32 %v1222_v59, %v1222_v59  ;;  %v2542_v3 = vmul.f32 %v581_v56, %v2355_v46 }
 0x1c7   : > { %v627_v29 = vpop.permute.xlu1 %626  ;;  %v586_v11 = vsub.f32 %v538_v40, %v570_v57  ;;  %v884_v8 = vsub.f32 %v2453_v30, %v2442_v22  ;;  %v2547_v17 = vmul.f32 %v581_v56, %v2330_v33  ;;  %v576_v35 = vsub.f32 %v2439_v21, %v560_v63 }
 0x1c8   : > { %v705_v12 = vsub.f32 %v627_v29, %v2466_v51  ;;  %v1142_v4 = vadd.f32 %v1126_v54, %v1030_v23  ;;  %v2553_v50 = vmul.f32 %v584_v31, %v2357_v47  ;;  %v2556_v59 = vmul.f32 %v584_v31, %v2355_v46  ;;  %v2567_v63 = vpop.permute.xlu0 %833 }
 0x1c9   : > { %v2559_v23 = vmul.f32 %v584_v31, %v2330_v33  ;;  %v2562_v40 = vmul.f32 %v583_v20, %v2357_v47  ;;  %v2565_v30 = vmul.f32 %v583_v20, %v2355_v46  ;;  %v915_v56 = vfloor.f32 %v899_v14 }
 0x1ca   : > { %v2550_v18 = vadd.f32 %v1238_v9, %v1142_v4  ;;  %v721_v41 = vadd.f32 0.5, %v705_v12  ;;  %3980 = vst [vmem:[#allocation23_spill] sm:$0xff] %v2553_v50  ;;  %v572_v21 = vfloor.f32 %v556_v0  ;;  %v569_v57 = vfloor.f32 %v553_v15 }
 0x1cb   : > { %3981 = vst [vmem:[#allocation24_spill] sm:$0xff] %v2556_v59  ;;  %v2571_v54 = vmul.f32 %v586_v11, %v2357_v47  ;;  %v2574_v29 = vmul.f32 %v583_v20, %v2330_v33  ;;  %v900_v31 = vadd.f32 0.5, %v884_v8  ;;  %v946_v9 = vmul.f32 %v576_v35, %v2357_v47 }
 0x1cc   : > { %3979 = vst [vmem:[#allocation22_spill] sm:$0xff] %v2550_v18  ;;  %v737_v4 = vfloor.f32 %v721_v41  ;;  %v2578_v52 = vmul.f32 %v586_v11, %v2355_v46  ;;  %v542_v0 = vsub.f32 %v2458_v42, %v2424_v6  ;;  %v885_v14 = vsub.f32 %v2463_v48, %v2442_v22 }
 0x1cd   : > { %3982 = vst [vmem:[#allocation25_spill] sm:$0xff] %v2559_v23  ;;  %701 = vperm.xlu1 %1981, %v2420_v2   ;;  %v1042_v15 = vmul.f32 %v576_v35, %v2355_v46  ;;  %v1154_v41 = vmul.f32 %v576_v35, %v2330_v33  ;;  %v588_v23 = vsub.f32 %v540_v19, %v572_v21  ;;  %v916_v59 = vfloor.f32 %v900_v31 }
 0x1ce   : > { %3983 = vst [vmem:[#allocation26_spill] sm:$0xff] %v2571_v54  ;;  %v753_v20 = vsub.f32 %v705_v12, %v737_v4  ;;  %v931_v54 = vsub.f32 %v2448_v27, %v915_v56  ;;  %v2594_v50 = vmul.f32 %v586_v11, %v2330_v33  ;;  %v558_v12 = vadd.f32 0.5, %v542_v0 }
 0x1cf   : > { %3984 = vst [vmem:[#allocation27_spill] sm:$0xff] %v2574_v29  ;;  %v632_v2 = vpop.permute.xlu1 %631  ;;  %v901_v4 = vadd.f32 0.5, %v885_v14  ;;  %v571_v29 = vfloor.f32 %v555_v60  ;;  %v2606_v56 = vmul.f32 %v588_v23, %v2355_v46  ;;  %v2609_v21 = vmul.f32 %v588_v23, %v2330_v33 }
 0x1d0   : > { %3985 = vst [vmem:[#allocation28_spill] sm:$0xff] %v2578_v52  ;;  %v706_v53 = vsub.f32 %v632_v2, %v2466_v51  ;;  %v585_v52 = vsub.f32 %v2445_v26, %v569_v57  ;;  %v962_v42 = vmul.f32 %v753_v20, %v2339_v38  ;;  %v1058_v48 = vmul.f32 %v753_v20, %v2341_v39 }
 0x1d1   : > { %v1170_v6 = vmul.f32 %v753_v20, %v2333_v34  ;;  %3986 = vst [vmem:[#allocation29_spill] sm:$0xff] %v2594_v50  ;;  %v2603_v26 = vmul.f32 %v588_v23, %v2357_v47  ;;  %v995_v60 = vmul.f32 %v931_v54, %v2327_v32  ;;  %v1091_v57 = vmul.f32 %v931_v54, %v2335_v36 }
 0x1d2   : > { %v722_v2 = vadd.f32 0.5, %v706_v53  ;;  %v2596_v35 = vadd.f32 %v962_v42, %v946_v9  ;;  %v2598_v27 = vadd.f32 %v1058_v48, %v1042_v15  ;;  %3991 = vst [vmem:[#allocation34_spill] sm:$0xff] %v2606_v56  ;;  %v2615_v31 = vmul.f32 %v585_v52, %v2357_v47 }
 0x1d3   : > { %v2600_v19 = vadd.f32 %v1170_v6, %v1154_v41  ;;  %3990 = vst [vmem:[#allocation33_spill] sm:$0xff] %v2603_v26  ;;  %v932_v6 = vsub.f32 %v884_v8, %v916_v59  ;;  %v1203_v9 = vmul.f32 %v931_v54, %v2337_v37  ;;  %v2619_v15 = vmul.f32 %v585_v52, %v2355_v46  ;;  %v2621_v41 = vpop.permute.xlu0 %838  ;;  %v864_v59 = vpop.permute.xlu2 %863 }
 0x1d4   : > { %3987 = vst [vmem:[#allocation30_spill] sm:$0xff] %v2596_v35  ;;  %v738_v11 = vfloor.f32 %v722_v2  ;;  %v3994_v42 = vlaneseq  ;;  %v574_v2 = vfloor.f32 %v558_v12  ;;  %v2629_v8 = vmul.f32 %v585_v52, %v2330_v33 }
 0x1d5   : > { %3988 = vst [vmem:[#allocation31_spill] sm:$0xff] %v2598_v27  ;;  %803 = vperm.xlu1 %1981, %v2392_v5   ;;  %v587_v5 = vsub.f32 %v2461_v45, %v571_v29  ;;  %v996_v35 = vmul.f32 %v932_v6, %v2327_v32  ;;  %v1204_v45 = vmul.f32 %v932_v6, %v2337_v37  ;;  %1982 = vrsqrt.f32 %v2550_v18 }
 0x1d6   : > { %3989 = vst [vmem:[#allocation32_spill] sm:$0xff] %v2600_v19  ;;  %v754_v20 = vsub.f32 %v706_v53, %v738_v11  ;;  %v2624_v48 = vshrl.u32 %v3994_v42, 7  ;;  %v917_v19 = vfloor.f32 %v901_v4  ;;  %v1092_v42 = vmul.f32 %v932_v6, %v2335_v36 }
 0x1d7   : > { %3992 = vst [vmem:[#allocation35_spill] sm:$0xff] %v2609_v21  ;;  %v637_v23 = vpop.permute.xlu1 %636  ;;  %v887_v29 = vsub.f32 %v2513_v55, %v2442_v22  ;;  %v2643_v21 = vmul.f32 %v587_v5, %v2357_v47  ;;  %v2652_v55 = vmul.f32 %v587_v5, %v2355_v46  ;;  %vm1467_vm3 = vcmp.eq.f32.partialorder %v2550_v18, inf }
 0x1d8   : > { %3993 = vst [vmem:[#allocation36_spill] sm:$0xff] %v2619_v15  ;;  %v707_v27 = vsub.f32 %v637_v23, %v2466_v51  ;;  %v963_v54 = vmul.f32 %v754_v20, %v2339_v38  ;;  %v1059_v53 = vmul.f32 %v754_v20, %v2341_v39  ;;  %v1171_v11 = vmul.f32 %v754_v20, %v2333_v34 }
 0x1d9   : > { %3995 = vst [vmem:[#allocation37_spill] sm:$0xff] %v2629_v8  ;;  %v590_v20 = vsub.f32 %v542_v0, %v574_v2  ;;  %v933_v56 = vsub.f32 %v885_v14, %v917_v19  ;;  %v2646_v26 = vadd.s32 32, %v2624_v48  ;;  %v2655_v2 = vmul.f32 %v587_v5, %v2330_v33 }
 0x1da   : > { %v979_v12 = vadd.f32 %v963_v54, %v2484_v43  ;;  %v1075_v52 = vadd.f32 %v1059_v53, %v2487_v16  ;;  %v1187_v4 = vadd.f32 %v1171_v11, %v2490_v25  ;;  %v723_v23 = vadd.f32 0.5, %v707_v27  ;;  %3997 = vst [vmem:[#allocation39_spill] sm:$0xff] %v2652_v55 }
 0x1db   : > { %3996 = vst [vmem:[#allocation38_spill] sm:$0xff] %v2646_v26  ;;  %v557_v43 = vadd.f32 0.5, %v2504_v1  ;;  %v903_v16 = vadd.f32 0.5, %v887_v29  ;;  %v894_v25 = vsub.f32 %v864_v59, %v2442_v22  ;;  %v874_v11 = vpop.permute.xlu2 %873  ;;  %vm1469_vm4 = vcmp.eq.f32.partialorder %v2550_v18, 0.0 }
 0x1dc   : > { %v1011_v50 = vadd.f32 %v995_v60, %v979_v12  ;;  %v1107_v6 = vadd.f32 %v1091_v57, %v1075_v52  ;;  %v1219_v8 = vadd.f32 %v1203_v9, %v1187_v4  ;;  %v739_v15 = vfloor.f32 %v723_v23  ;;  %3998 = vst [vmem:[#allocation40_spill] sm:$0xff] %v2655_v2  ;;  %v844_v52 = vpop.permute.xlu0 %843 }
 0x1dd   : > { %v2658_v60 = vmul.f32 %v590_v20, %v2357_v47  ;;  %v910_v4 = vadd.f32 0.5, %v894_v25 }
 0x1de   : > { %v1027_v54 = vmul.f32 %v1011_v50, %v1011_v50  ;;  %v1123_v0 = vmul.f32 %v1107_v6, %v1107_v6  ;;  %v755_v14 = vsub.f32 %v707_v27, %v739_v15  ;;  %v1235_v57 = vmul.f32 %v1219_v8, %v1219_v8 }
 0x1df   : > { %v642_v19 = vpop.permute.xlu1 %641  ;;  %3999 = vst [vmem:[#allocation41_spill] sm:$0xff] %v2658_v60  ;;  %v573_v27 = vfloor.f32 %v557_v43  ;;  %v919_v15 = vfloor.f32 %v903_v16  ;;  %v896_v43 = vsub.f32 %v874_v11, %v2442_v22 }
 0x1e0   : > { %v708_v9 = vsub.f32 %v642_v19, %v2466_v51  ;;  %v1139_v53 = vadd.f32 %v1123_v0, %v1027_v54  ;;  %v964_v59 = vmul.f32 %v755_v14, %v2339_v38  ;;  %v1060_v12 = vmul.f32 %v755_v14, %v2341_v39  ;;  %v2669_v0 = vpop.eup %1982 }
 0x1e1   : > { %v1172_v50 = vmul.f32 %v755_v14, %v2333_v34  ;;  %v2672_v19 = vmul.f32 %v590_v20, %v2355_v46  ;;  %v2675_v14 = vmul.f32 %v590_v20, %v2330_v33  ;;  %v1461_v20 = vmul.f32 %v2669_v0, %v2550_v18 }
 0x1e2   : > { %v724_v5 = vadd.f32 0.5, %v708_v9  ;;  %v2664_v23 = vadd.f32 %v1235_v57, %v1139_v53  ;;  %v980_v6 = vadd.f32 %v964_v59, %v2508_v24  ;;  %v1076_v8 = vadd.f32 %v1060_v12, %v2518_v44 }
 0x1e3   : > { %v1188_v54 = vadd.f32 %v1172_v50, %v2521_v49  ;;  %4001 = vst [vmem:[#allocation43_spill] sm:$0xff] %v2672_v19  ;;  %v997_v57 = vmul.f32 %v933_v56, %v2327_v32  ;;  %v1093_v53 = vmul.f32 %v933_v56, %v2335_v36  ;;  %v1205_v24 = vmul.f32 %v933_v56, %v2337_v37 }
 0x1e4   : > { %4000 = vst [vmem:[#allocation42_spill] sm:$0xff] %v2664_v23  ;;  %v740_v16 = vfloor.f32 %v724_v5  ;;  %v888_v44 = vsub.f32 %v2567_v63, %v2442_v22  ;;  %v1012_v49 = vadd.f32 %v996_v35, %v980_v6  ;;  %v1108_v59 = vadd.f32 %v1092_v42, %v1076_v8  ;;  %v849_v8 = vpop.permute.xlu0 %848 }
 0x1e5   : > { %4002 = vst [vmem:[#allocation44_spill] sm:$0xff] %v2675_v14  ;;  %v1220_v12 = vadd.f32 %v1204_v45, %v1188_v54  ;;  %v589_v14 = vsub.f32 %v2504_v1, %v573_v27  ;;  %v935_v11 = vsub.f32 %v887_v29, %v919_v15  ;;  %v926_v5 = vfloor.f32 %v910_v4 }
 0x1e6   : > { %v756_v50 = vsub.f32 %v708_v9, %v740_v16  ;;  %v912_v60 = vadd.f32 0.5, %v896_v43  ;;  %v1028_v26 = vmul.f32 %v1012_v49, %v1012_v49  ;;  %v1124_v2 = vmul.f32 %v1108_v59, %v1108_v59 }
 0x1e7   : > { %v652_v19 = vpop.permute.xlu1 %651  ;;  %v904_v55 = vadd.f32 0.5, %v888_v44  ;;  %v889_v45 = vsub.f32 %v2621_v41, %v2442_v22  ;;  %v1236_v1 = vmul.f32 %v1220_v12, %v1220_v12  ;;  %v1462_v27 = vmul.f32 %v2669_v0, %v1461_v20 }
 0x1e8   : > { %v965_v56 = vmul.f32 %v756_v50, %v2339_v38  ;;  %v1061_v63 = vmul.f32 %v756_v50, %v2341_v39  ;;  %v1173_v35 = vmul.f32 %v756_v50, %v2333_v34  ;;  %v710_v42 = vsub.f32 %v652_v19, %v2466_v51 }
 0x1e9   : > { %v1140_v9 = vadd.f32 %v1124_v2, %v1028_v26  ;;  %v942_v15 = vsub.f32 %v894_v25, %v926_v5  ;;  %v2697_v54 = vmul.f32 %v589_v14, %v2357_v47  ;;  %v2702_v26 = vmul.f32 %v589_v14, %v2355_v46 }
 0x1ea   : > { %v981_v29 = vadd.f32 %v965_v56, %v2473_v7  ;;  %v1077_v4 = vadd.f32 %v1061_v63, %v2477_v13  ;;  %v1189_v6 = vadd.f32 %v1173_v35, %v2480_v58  ;;  %v726_v49 = vadd.f32 0.5, %v710_v42 }
 0x1eb   : > { %4003 = vst [vmem:[#allocation45_spill] sm:$0xff] %v2697_v54  ;;  %v2699_v16 = vadd.f32 %v1236_v1, %v1140_v9  ;;  %v928_v41 = vfloor.f32 %v912_v60  ;;  %v2705_v25 = vmul.f32 %v589_v14, %v2330_v33  ;;  %v999_v13 = vmul.f32 %v935_v11, %v2327_v32 }
 0x1ec   : > { %v1013_v19 = vadd.f32 %v997_v57, %v981_v29  ;;  %4005 = vst [vmem:[#allocation47_spill] sm:$0xff] %v2702_v26  ;;  %v1109_v7 = vadd.f32 %v1093_v53, %v1077_v4  ;;  %v1221_v2 = vadd.f32 %v1205_v24, %v1189_v6  ;;  %v920_v58 = vfloor.f32 %v904_v55 }
 0x1ed   : > { %4004 = vst [vmem:[#allocation46_spill] sm:$0xff] %v2699_v16  ;;  %v905_v59 = vadd.f32 0.5, %v889_v45  ;;  %v1463_v12 = vmul.f32 0.5, %v1462_v27  ;;  %v890_v50 = vsub.f32 %v844_v52, %v2442_v22  ;;  %v1095_v56 = vmul.f32 %v935_v11, %v2335_v36 }
 0x1ee   : > { %4006 = vst [vmem:[#allocation48_spill] sm:$0xff] %v2705_v25  ;;  %v1029_v20 = vmul.f32 %v1013_v19, %v1013_v19  ;;  %v1125_v5 = vmul.f32 %v1109_v7, %v1109_v7  ;;  %v1207_v63 = vmul.f32 %v935_v11, %v2337_v37  ;;  %v2712_v60 = vmul.f32 %v942_v15, %v2327_v32  ;;  %v854_v7 = vpop.permute.xlu0 %853 }
 0x1ef   : > { %v657_v57 = vpop.permute.xlu1 %656  ;;  %v742_v53 = vfloor.f32 %v726_v49  ;;  %v944_v14 = vsub.f32 %v896_v43, %v928_v41  ;;  %v1237_v35 = vmul.f32 %v1221_v2, %v1221_v2  ;;  %v2716_v9 = vmul.f32 %v942_v15, %v2335_v36 }
 0x1f0   : > { %v1141_v24 = vadd.f32 %v1125_v5, %v1029_v20  ;;  %v711_v55 = vsub.f32 %v657_v57, %v2466_v51  ;;  %v936_v52 = vsub.f32 %v888_v44, %v920_v58  ;;  %v921_v1 = vfloor.f32 %v905_v59 }
 0x1f1   : > { %v758_v29 = vsub.f32 %v710_v42, %v742_v53  ;;  %v1464_v27 = vsub.f32 1.5, %v1463_v12  ;;  %v906_v4 = vadd.f32 0.5, %v890_v50  ;;  %v891_v11 = vsub.f32 %v849_v8, %v2442_v22 }
 0x1f2   : > { %v2718_v6 = vadd.f32 %v1237_v35, %v1141_v24  ;;  %1984 = vrsqrt.f32 %v2664_v23  ;;  %v2727_v44 = vmul.f32 %v942_v15, %v2337_v37  ;;  %v2730_v42 = vmul.f32 %v944_v14, %v2327_v32 }
 0x1f3   : > { %v967_v43 = vmul.f32 %v758_v29, %v2339_v38  ;;  %v1063_v19 = vmul.f32 %v758_v29, %v2341_v39  ;;  %v1175_v49 = vmul.f32 %v758_v29, %v2333_v34  ;;  %v727_v2 = vadd.f32 0.5, %v711_v55 }
 0x1f4   : > { %4007 = vst [vmem:[#allocation49_spill] sm:$0xff] %v2718_v6  ;;  %v1000_v8 = vmul.f32 %v936_v52, %v2327_v32  ;;  %v2734_v58 = vmul.f32 %v944_v14, %v2335_v36  ;;  %v1465_v20 = vmul.f32 %v2669_v0, %v1464_v27  ;;  %v1096_v15 = vmul.f32 %v936_v52, %v2335_v36 }
 0x1f5   : > { %4008 = vst [vmem:[#allocation50_spill] sm:$0xff] %v2727_v44  ;;  %v983_v59 = vadd.f32 %v967_v43, %v2539_v10  ;;  %v1079_v12 = vadd.f32 %v1063_v19, %v2542_v3  ;;  %v937_v5 = vsub.f32 %v889_v45, %v921_v1  ;;  %v1191_v57 = vadd.f32 %v1175_v49, %v2547_v17 }
 0x1f6   : > { %4009 = vst [vmem:[#allocation51_spill] sm:$0xff] %v2730_v42  ;;  %v922_v24 = vfloor.f32 %v906_v4  ;;  %v907_v35 = vadd.f32 0.5, %v891_v11  ;;  %1986 = vrsqrt.f32 %v2699_v16  ;;  %v743_v3 = vfloor.f32 %v727_v2 }
 0x1f7   : > { %4010 = vst [vmem:[#allocation52_spill] sm:$0xff] %v2734_v58  ;;  %v662_v53 = vpop.permute.xlu1 %661  ;;  %v1015_v29 = vadd.f32 %v999_v13, %v983_v59  ;;  %v1111_v41 = vadd.f32 %v1095_v56, %v1079_v12  ;;  %v1208_v58 = vmul.f32 %v936_v52, %v2337_v37  ;;  %v1223_v10 = vadd.f32 %v1207_v63, %v1191_v57 }
 0x1f8   : > { %v2744_v43 = vpop.eup %1984  ;;  %v2747_v0 = vmul.f32 %v944_v14, %v2337_v37  ;;  %v712_v17 = vsub.f32 %v662_v53, %v2466_v51  ;;  %v1466_v1 = vmul.f32 %v1465_v20, %v2550_v18  ;;  %v2752_v13 = vmul.f32 %v937_v5, %v2327_v32 }
 0x1f9   : > { %v1031_v27 = vmul.f32 %v1015_v29, %v1015_v29  ;;  %v1127_v45 = vmul.f32 %v1111_v41, %v1111_v41  ;;  %v759_v56 = vsub.f32 %v711_v55, %v743_v3  ;;  %v2755_v52 = vadd.s32 16, %v2624_v48  ;;  %v859_v29 = vpop.permute.xlu0 %858 }
 0x1fa   : > { %4011 = vst [vmem:[#allocation53_spill] sm:$0xff] %v2747_v0  ;;  %v938_v63 = vsub.f32 %v890_v50, %v922_v24  ;;  %v923_v4 = vfloor.f32 %v907_v35  ;;  %v1239_v49 = vmul.f32 %v1223_v10, %v1223_v10  ;;  %v1425_v14 = vmul.f32 %v2744_v43, %v2664_v23 }
 0x1fb   : > { %4012 = vst [vmem:[#allocation54_spill] sm:$0xff] %v2755_v52  ;;  %v1143_v19 = vadd.f32 %v1127_v45, %v1031_v27  ;;  %v968_v41 = vmul.f32 %v759_v56, %v2339_v38  ;;  %v1064_v2 = vmul.f32 %v759_v56, %v2341_v39  ;;  %v1176_v59 = vmul.f32 %v759_v56, %v2333_v34 }
 0x1fc   : > { %v1097_v12 = vmul.f32 %v937_v5, %v2335_v36  ;;  %1988 = vrsqrt.f32 %v2718_v6  ;;  %v728_v20 = vadd.f32 0.5, %v712_v17  ;;  %v2766_v50 = vpop.eup %1986  ;;  %v1209_v57 = vmul.f32 %v937_v5, %v2337_v37 }
 0x1fd   : > { %v2764_v55 = vadd.f32 %v1239_v49, %v1143_v19  ;;  %v984_v53 = vadd.f32 %v968_v41, %v2525_v61  ;;  %v1080_v24 = vadd.f32 %v1064_v2, %v2529_v28  ;;  %v1192_v35 = vadd.f32 %v1176_v59, %v2532_v62 }
 0x1fe   : > { %v1468_v3 = vsel %vm1467_vm3, %v2550_v18, %v1466_v1  ;;  %v2776_v27 = vmul.f32 %v938_v63, %v2327_v32  ;;  %v892_v45 = vsub.f32 %v854_v7, %v2442_v22  ;;  %v2780_v56 = vadd.s32 24, %v2624_v48 }
 0x1ff   : > { %4013 = vst [vmem:[#allocation55_spill] sm:$0xff] %v2764_v55  ;;  %v667_v10 = vpop.permute.xlu1 %666  ;;  %v1426_v61 = vmul.f32 %v2744_v43, %v1425_v14  ;;  %v939_v5 = vsub.f32 %v891_v11, %v923_v4  ;;  %v1016_v28 = vadd.f32 %v1000_v8, %v984_v53  ;;  %v1112_v19 = vadd.f32 %v1096_v15, %v1080_v24 }
 0x200   : > { %4014 = vst [vmem:[#allocation56_spill] sm:$0xff] %v2780_v56  ;;  %v1437_v62 = vmul.f32 %v2766_v50, %v2699_v16  ;;  %v2786_v49 = vmul.f32 %v938_v63, %v2335_v36  ;;  %v1224_v1 = vadd.f32 %v1208_v58, %v1192_v35  ;;  %v744_v41 = vfloor.f32 %v728_v20 }
 0x201   : > { %1990 = vrsqrt.f32 %v2764_v55  ;;  %v1032_v2 = vmul.f32 %v1016_v28, %v1016_v28  ;;  %v1128_v7 = vmul.f32 %v1112_v19, %v1112_v19  ;;  %v713_v59 = vsub.f32 %v667_v10, %v2466_v51 }
 0x202   : > { %v2790_v23 = vpop.eup %1988  ;;  %v2794_v11 = vmul.f32 %v938_v63, %v2337_v37  ;;  %v908_v8 = vadd.f32 0.5, %v892_v45  ;;  %v760_v15 = vsub.f32 %v712_v17, %v744_v41  ;;  %v2797_v4 = vadd.s32 40, %v2624_v48 }
 0x203   : > { %v1427_v58 = vmul.f32 0.5, %v1426_v61  ;;  %v2800_v14 = vmul.f32 %v939_v5, %v2327_v32  ;;  %v1144_v20 = vadd.f32 %v1128_v7, %v1032_v2  ;;  %v1240_v53 = vmul.f32 %v1224_v1, %v1224_v1  ;;  %v4017_v7 = vld [vmem:[#allocation27_spill] sm:$0xff] }
 0x204   : > { %4015 = vst [vmem:[#allocation57_spill] sm:$0xff] %v2797_v4  ;;  %v1438_v24 = vmul.f32 %v2766_v50, %v1437_v62  ;;  %v969_v35 = vmul.f32 %v760_v15, %v2339_v38  ;;  %v1065_v10 = vmul.f32 %v760_v15, %v2341_v39  ;;  %v1177_v63 = vmul.f32 %v760_v15, %v2333_v34 }
 0x205   : > { %v1449_v17 = vmul.f32 %v2790_v23, %v2718_v6  ;;  %v2808_v28 = vadd.f32 %v1240_v53, %v1144_v20  ;;  %v893_v61 = vsub.f32 %v859_v29, %v2442_v22  ;;  %v729_v19 = vadd.f32 0.5, %v713_v59  ;;  %v869_v29 = vpop.permute.xlu0 %868 }
 0x206   : > { %v2812_v2 = vmul.f32 %v939_v5, %v2335_v36  ;;  %v985_v62 = vadd.f32 %v969_v35, %v2562_v40  ;;  %v1081_v1 = vadd.f32 %v1065_v10, %v2565_v30  ;;  %v1193_v0 = vadd.f32 %v1177_v63, %v4017_v7 }
 0x207   : > { %4016 = vst [vmem:[#allocation58_spill] sm:$0xff] %v2808_v28  ;;  %v672_v41 = vpop.permute.xlu1 %671  ;;  %v2817_v42 = vpop.eup %1990  ;;  %v2821_v20 = vmul.f32 %v939_v5, %v2337_v37  ;;  %v924_v53 = vfloor.f32 %v908_v8  ;;  %v2824_v4 = vadd.s32 48, %v2624_v48  ;;  %v1439_v25 = vmul.f32 0.5, %v1438_v24 }
 0x208   : > { %v1017_v26 = vadd.f32 %v2752_v13, %v985_v62  ;;  %v1113_v40 = vadd.f32 %v1097_v12, %v1081_v1  ;;  %v1225_v35 = vadd.f32 %v1209_v57, %v1193_v0  ;;  %v1428_v30 = vsub.f32 1.5, %v1427_v58 }
 0x209   : > { %4018 = vst [vmem:[#allocation27_spill] sm:$0xff] %v2824_v4  ;;  %v1450_v10 = vmul.f32 %v2790_v23, %v1449_v17  ;;  %v909_v63 = vadd.f32 0.5, %v893_v61  ;;  %v745_v7 = vfloor.f32 %v729_v19  ;;  %v1473_v15 = vmul.f32 %v2817_v42, %v2764_v55 }
 0x20a   : > { %v1033_v5 = vmul.f32 %v1017_v26, %v1017_v26  ;;  %v1129_v54 = vmul.f32 %v1113_v40, %v1113_v40  ;;  %v714_v8 = vsub.f32 %v672_v41, %v2466_v51  ;;  %v940_v44 = vsub.f32 %v892_v45, %v924_v53  ;;  %v4022_v53 = vld [vmem:[#allocation24_spill] sm:$0xff]  ;;  %v4023_v40 = vld [vmem:[#allocation25_spill] sm:$0xff] }
 0x20b   : > { %v2832_v4 = vsub.f32 %v869_v29, %v2442_v22  ;;  %v761_v24 = vsub.f32 %v713_v59, %v745_v7  ;;  %v4019_v13 = vand.u32 2147483648, %v2550_v18  ;;  %v1440_v12 = vsub.f32 1.5, %v1439_v25  ;;  %v4021_v25 = vld [vmem:[#allocation23_spill] sm:$0xff] }
 0x20c   : > { %v1145_v57 = vadd.f32 %v1129_v54, %v1033_v5  ;;  %v1241_v58 = vmul.f32 %v1225_v35, %v1225_v35  ;;  %v730_v17 = vadd.f32 0.5, %v714_v8  ;;  %v925_v19 = vfloor.f32 %v909_v63 }
 0x20d   : > { %v2838_v0 = vsel %vm1469_vm4, %v4019_v13, %v1468_v3  ;;  %v970_v26 = vmul.f32 %v761_v24, %v2339_v38  ;;  %v1066_v41 = vmul.f32 %v761_v24, %v2341_v39  ;;  %v1178_v45 = vmul.f32 %v761_v24, %v2333_v34 }
 0x20e   : > { %v1451_v59 = vmul.f32 0.5, %v1450_v10  ;;  %v1474_v1 = vmul.f32 %v2817_v42, %v1473_v15  ;;  %1992 = vrsqrt.f32 %v2808_v28  ;;  %v2847_v3 = vadd.f32 %v1241_v58, %v1145_v57 }
 0x20f   : > { %v2843_v62 = vpop.permute.xlu1 %524  ;;  %v986_v54 = vadd.f32 %v970_v26, %v4021_v25  ;;  %v1082_v29 = vadd.f32 %v1066_v41, %v4022_v53  ;;  %v1194_v35 = vadd.f32 %v1178_v45, %v4023_v40  ;;  %v746_v63 = vfloor.f32 %v730_v17 }
 0x210   : > { %4020 = vst [vmem:[#allocation59_spill] sm:$0xff] %v2847_v3  ;;  %v2853_v7 = vmul.f32 %v2744_v43, %v1428_v30  ;;  %v1441_v5 = vmul.f32 %v2766_v50, %v1440_v12  ;;  %vm1443_vm5 = vcmp.eq.f32.partialorder %v2699_v16, inf  ;;  %v911_v10 = vadd.f32 0.5, %v2832_v4  ;;  %v879_v43 = vpop.permute.xlu0 %878 }
 0x211   : > { %v2860_v24 = vmul.f32 %v940_v44, %v2327_v32  ;;  %v2863_v13 = vmul.f32 %v940_v44, %v2335_v36  ;;  %v1018_v57 = vadd.f32 %v2776_v27, %v986_v54  ;;  %v1114_v58 = vadd.f32 %v2786_v49, %v1082_v29 }
 0x212   : > { %4024 = vst [vmem:[#allocation23_spill] sm:$0xff] %v2853_v7  ;;  %v1452_v30 = vsub.f32 1.5, %v1451_v59  ;;  %v1475_v17 = vmul.f32 0.5, %v1474_v1  ;;  %v941_v50 = vsub.f32 %v893_v61, %v925_v19  ;;  %v1226_v12 = vadd.f32 %v2794_v11, %v1194_v35 }
 0x213   : > { %1994 = vrsqrt.f32 %v2847_v3  ;;  %v1034_v26 = vmul.f32 %v1018_v57, %v1018_v57  ;;  %v1130_v41 = vmul.f32 %v1114_v58, %v1114_v58  ;;  %v762_v45 = vsub.f32 %v714_v8, %v746_v63 }
 0x214   : > { %v2869_v25 = vpop.eup %1992  ;;  %v1442_v53 = vmul.f32 %v1441_v5, %v2699_v16  ;;  %v927_v40 = vfloor.f32 %v911_v10  ;;  %v1242_v15 = vmul.f32 %v1226_v12, %v1226_v12  ;;  %v897_v27 = vsub.f32 %v879_v43, %v2442_v22  ;;  %v4025_v10 = vld [vmem:[#allocation36_spill] sm:$0xff]  ;;  %v4026_v43 = vld [vmem:[#allocation37_spill] sm:$0xff] }
 0x215   : > { %v1146_v49 = vadd.f32 %v1130_v41, %v1034_v26  ;;  %v971_v59 = vmul.f32 %v762_v45, %v2339_v38  ;;  %v1067_v61 = vmul.f32 %v762_v45, %v2341_v39  ;;  %v1179_v11 = vmul.f32 %v762_v45, %v2333_v34 }
 0x216   : > { %v1453_v1 = vmul.f32 %v2790_v23, %v1452_v30  ;;  %vm1455_vm6 = vcmp.eq.f32.partialorder %v2718_v6, inf  ;;  %v1476_v8 = vsub.f32 1.5, %v1475_v17  ;;  %v2879_v54 = vmul.f32 %v940_v44, %v2337_v37 }
 0x217   : > { %v677_v19 = vpop.permute.xlu1 %676  ;;  %v1485_v35 = vmul.f32 %v2869_v25, %v2808_v28  ;;  %v2884_v63 = vadd.f32 %v1242_v15, %v1146_v49  ;;  %v987_v5 = vadd.f32 %v971_v59, %v2615_v31  ;;  %v1083_v57 = vadd.f32 %v1067_v61, %v4025_v10 }
 0x218   : > { %v715_v29 = vsub.f32 %v677_v19, %v2466_v51  ;;  %v2889_v58 = vmul.f32 %v941_v50, %v2327_v32  ;;  %v2892_v23 = vmul.f32 %v941_v50, %v2335_v36  ;;  %v1195_v44 = vadd.f32 %v1179_v11, %v4026_v43 }
 0x219   : > { %v2895_v17 = vpop.eup %1994  ;;  %v2900_v15 = vsel %vm1443_vm5, %v2699_v16, %v1442_v53  ;;  %v943_v12 = vsub.f32 %v2832_v4, %v927_v40  ;;  %v913_v26 = vadd.f32 0.5, %v897_v27  ;;  %v1454_v41 = vmul.f32 %v1453_v1, %v2718_v6 }
 0x21a   : > { %v731_v30 = vadd.f32 0.5, %v715_v29  ;;  %v2906_v45 = vmul.f32 %v941_v50, %v2337_v37  ;;  %v1019_v49 = vadd.f32 %v2800_v14, %v987_v5  ;;  %v1115_v59 = vadd.f32 %v2812_v2, %v1083_v57 }
 0x21b   : > { %v1477_v61 = vmul.f32 %v2817_v42, %v1476_v8  ;;  %vm1479_vm7 = vcmp.eq.f32.partialorder %v2764_v55, inf  ;;  %v1486_v53 = vmul.f32 %v2869_v25, %v1485_v35  ;;  %v1227_v11 = vadd.f32 %v2821_v20, %v1195_v44 }
 0x21c   : > { %v747_v19 = vfloor.f32 %v731_v30  ;;  %v1497_v4 = vmul.f32 %v2895_v17, %v2847_v3  ;;  %v1035_v40 = vmul.f32 %v1019_v49, %v1019_v49  ;;  %v1131_v1 = vmul.f32 %v1115_v59, %v1115_v59  ;;  %v4027_v30 = vld [vmem:[#allocation21_spill] sm:$0xff] }
 0x21d   : > { %v2917_v50 = vadd.s32 56, %v2624_v48  ;;  %v2920_v14 = vmul.f32 %v943_v12, %v2327_v32  ;;  %v2923_v42 = vmul.f32 %v943_v12, %v2335_v36  ;;  %1996 = vrsqrt.f32 %v2884_v63 }
 0x21e   : > { %v929_v2 = vfloor.f32 %v913_v26  ;;  %v1147_v20 = vadd.f32 %v1131_v1, %v1035_v40  ;;  %v1243_v35 = vmul.f32 %v1227_v11, %v1227_v11  ;;  %v763_v5 = vsub.f32 %v715_v29, %v747_v19  ;;  %v4031_v19 = vld [vmem:[#allocation29_spill] sm:$0xff] }
 0x21f   : > { %v682_v8 = vpop.permute.xlu1 %681  ;;  %v2930_v57 = vsel %vm1455_vm6, %v2718_v6, %v1454_v41  ;;  %v1478_v43 = vmul.f32 %v1477_v61, %v2764_v55  ;;  %v1487_v44 = vmul.f32 0.5, %v1486_v53  ;;  %v543_v49 = vsub.f32 %v2843_v62, %v4027_v30 }
 0x220   : > { %v716_v10 = vsub.f32 %v682_v8, %v2466_v51  ;;  %v1498_v59 = vmul.f32 %v2895_v17, %v1497_v4  ;;  %v2936_v26 = vadd.f32 %v1243_v35, %v1147_v20  ;;  %v972_v11 = vmul.f32 %v763_v5, %v2339_v38  ;;  %v4029_v35 = vld [vmem:[#allocation26_spill] sm:$0xff] }
 0x221   : > { %v1068_v29 = vmul.f32 %v763_v5, %v2341_v39  ;;  %v945_v40 = vsub.f32 %v897_v27, %v929_v2  ;;  %v1180_v41 = vmul.f32 %v763_v5, %v2333_v34  ;;  %v2943_v61 = vmul.f32 %v943_v12, %v2337_v37  ;;  %v4030_v2 = vld [vmem:[#allocation28_spill] sm:$0xff] }
 0x222   : > { %v732_v1 = vadd.f32 0.5, %v716_v10  ;;  %1998 = vrsqrt.f32 %v2936_v26  ;;  %v2947_v62 = vadd.s32 64, %v2624_v48  ;;  %v2950_v53 = vadd.s32 72, %v2624_v48 }
 0x223   : > { %v2952_v4 = vpop.eup %1996  ;;  %v1488_v8 = vsub.f32 1.5, %v1487_v44  ;;  %v559_v20 = vadd.f32 0.5, %v543_v49  ;;  %v988_v27 = vadd.f32 %v972_v11, %v4029_v35  ;;  %v1084_v5 = vadd.f32 %v1068_v29, %v4030_v2 }
 0x224   : > { %4028 = vst [vmem:[#allocation24_spill] sm:$0xff] %v2950_v53  ;;  %v2959_v12 = vsel %vm1479_vm7, %v2764_v55, %v1478_v43  ;;  %v1499_v30 = vmul.f32 0.5, %v1498_v59  ;;  %v1196_v31 = vadd.f32 %v1180_v41, %v4031_v19  ;;  %v748_v18 = vfloor.f32 %v732_v1 }
 0x225   : > { %v2964_v53 = vmul.f32 %v945_v40, %v2327_v32  ;;  %v1020_v44 = vadd.f32 %v2860_v24, %v988_v27  ;;  %v1116_v11 = vadd.f32 %v2863_v13, %v1084_v5  ;;  %vm1491_vm8 = vcmp.eq.f32.partialorder %v2808_v28, inf }
 0x226   : > { %v1509_v43 = vmul.f32 %v2952_v4, %v2884_v63  ;;  %v1228_v59 = vadd.f32 %v2879_v54, %v1196_v31  ;;  %v764_v29 = vsub.f32 %v716_v10, %v748_v18  ;;  %v1489_v41 = vmul.f32 %v2869_v25, %v1488_v8 }
 0x227   : > { %4032 = vst [vmem:[#allocation25_spill] sm:$0xff] %v2964_v53  ;;  %v687_v35 = vpop.permute.xlu1 %686  ;;  %v575_v1 = vfloor.f32 %v559_v20  ;;  %v1036_v2 = vmul.f32 %v1020_v44, %v1020_v44  ;;  %v1132_v7 = vmul.f32 %v1116_v11, %v1116_v11  ;;  %v1500_v24 = vsub.f32 1.5, %v1499_v30  ;;  %v4033_v20 = vld [vmem:[#allocation39_spill] sm:$0xff] }
 0x228   : > { %v717_v19 = vsub.f32 %v687_v35, %v2466_v51  ;;  %v2974_v32 = vpop.eup %1998  ;;  %v1244_v13 = vmul.f32 %v1228_v59, %v1228_v59  ;;  %v973_v27 = vmul.f32 %v764_v29, %v2339_v38  ;;  %v1069_v5 = vmul.f32 %v764_v29, %v2341_v39 }
 0x229   : > { %v1521_v53 = vmul.f32 %v2974_v32, %v2936_v26  ;;  %v1148_v54 = vadd.f32 %v1132_v7, %v1036_v2  ;;  %v1181_v18 = vmul.f32 %v764_v29, %v2333_v34  ;;  %v1510_v25 = vmul.f32 %v2952_v4, %v1509_v43  ;;  %v4034_v7 = vld [vmem:[#allocation40_spill] sm:$0xff] }
 0x22a   : > { %v733_v31 = vadd.f32 0.5, %v717_v19  ;;  %v2983_v10 = vmul.f32 %v945_v40, %v2335_v36  ;;  %v989_v8 = vadd.f32 %v973_v27, %v2643_v21  ;;  %v1085_v30 = vadd.f32 %v1069_v5, %v4033_v20 }
 0x22b   : > { %vm1445_vm9 = vcmp.eq.f32.partialorder %v2699_v16, 0.0  ;;  %v1490_v44 = vmul.f32 %v1489_v41, %v2808_v28  ;;  %vm1503_vm10 = vcmp.eq.f32.partialorder %v2847_v3, inf  ;;  %v2990_v11 = vadd.f32 %v1244_v13, %v1148_v54 }
 0x22c   : > { %v1197_v35 = vadd.f32 %v1181_v18, %v4034_v7  ;;  %v749_v59 = vfloor.f32 %v733_v31  ;;  %v1501_v43 = vmul.f32 %v2895_v17, %v1500_v24  ;;  %v2995_v29 = vmul.f32 %v945_v40, %v2337_v37 }
 0x22d   : > { %v1021_v21 = vadd.f32 %v2889_v58, %v989_v8  ;;  %v1117_v2 = vadd.f32 %v2892_v23, %v1085_v30  ;;  %v1522_v27 = vmul.f32 %v2974_v32, %v1521_v53  ;;  %v591_v5 = vsub.f32 %v543_v49, %v575_v1 }
 0x22e   : > { %2000 = vrsqrt.f32 %v2990_v11  ;;  %v3002_v13 = vadd.s32 80, %v2624_v48  ;;  %v1511_v54 = vmul.f32 0.5, %v1510_v25  ;;  %v1229_v17 = vadd.f32 %v2906_v45, %v1197_v35 }
 0x22f   : > { %v692_v41 = vpop.permute.xlu1 %691  ;;  %v1037_v18 = vmul.f32 %v1021_v21, %v1021_v21  ;;  %v1133_v31 = vmul.f32 %v1117_v2, %v1117_v2  ;;  %vm1457_vm11 = vcmp.eq.f32.partialorder %v2718_v6, 0.0  ;;  %vm1481_vm12 = vcmp.eq.f32.partialorder %v2764_v55, 0.0  ;;  %v4035_v21 = vld [vmem:[#allocation33_spill] sm:$0xff] }
 0x230   : > { %v1492_v58 = vsel %vm1491_vm8, %v2808_v28, %v1490_v44  ;;  %v765_v49 = vsub.f32 %v717_v19, %v749_v59  ;;  %v718_v40 = vsub.f32 %v692_v41, %v2466_v51  ;;  %v1502_v53 = vmul.f32 %v1501_v43, %v2847_v3 }
 0x231   : > { %v1149_v1 = vadd.f32 %v1133_v31, %v1037_v18  ;;  %v1245_v24 = vmul.f32 %v1229_v17, %v1229_v17  ;;  %v3014_v25 = vadd.s32 88, %v2624_v48  ;;  %v1523_v45 = vmul.f32 0.5, %v1522_v27  ;;  %v4036_v27 = vld [vmem:[#allocation34_spill] sm:$0xff]  ;;  %v4037_v18 = vld [vmem:[#allocation35_spill] sm:$0xff] }
 0x232   : > { %v974_v8 = vmul.f32 %v765_v49, %v2339_v38  ;;  %v1070_v20 = vmul.f32 %v765_v49, %v2341_v39  ;;  %v1182_v30 = vmul.f32 %v765_v49, %v2333_v34  ;;  %vm1493_vm13 = vcmp.eq.f32.partialorder %v2808_v28, 0.0 }
 0x233   : > { %v1512_v44 = vsub.f32 1.5, %v1511_v54  ;;  %v3021_v19 = vmul.f32 %v591_v5, %v2357_v47  ;;  %v3023_v7 = vadd.f32 %v1245_v24, %v1149_v1  ;;  %v734_v35 = vadd.f32 0.5, %v718_v40  ;;  %v4038_v54 = vld [vmem:[#allocation19_spill] sm:$0xff] }
 0x234   : > { %v3025_v59 = vpop.eup %2000  ;;  %vm1505_vm14 = vcmp.eq.f32.partialorder %v2847_v3, 0.0  ;;  %v3029_v43 = vmul.f32 %v591_v5, %v2355_v46  ;;  %v990_v2 = vadd.f32 %v974_v8, %v4035_v21  ;;  %v1086_v41 = vadd.f32 %v1070_v20, %v4036_v27  ;;  %v4040_v20 = vld [vmem:[#allocation50_spill] sm:$0xff] }
 0x235   : > { %v1198_v31 = vadd.f32 %v1182_v30, %v4037_v18  ;;  %vm1268_vm15 = vcmp.lt.s32.totalorder %v2755_v52, %v4038_v54  ;;  %v1504_v47 = vsel %vm1503_vm10, %v2847_v3, %v1502_v53  ;;  %v3040_v17 = vmul.f32 %v591_v5, %v2330_v33 }
 0x236   : > { %2002 = vrsqrt.f32 %v3023_v7  ;;  %vm1269_vm1 = vcmp.lt.s32.totalorder %v2780_v56, %v4038_v54  ;;  %v4039_v46 = vand.u32 2147483648, %v2699_v16  ;;  %vm1515_vm2 = vcmp.eq.f32.partialorder %v2884_v63, inf  ;;  %vm3129_vm8 = vmand %vm1268_vm15, %vm2375_vm0  ;;  %v4061_v56 = vld [vmem:[#allocation52_spill] sm:$0xff] }
 0x237   : > { %v1524_v1 = vsub.f32 1.5, %v1523_v45  ;;  %v1533_v53 = vmul.f32 %v3025_v59, %v2990_v11  ;;  %v1022_v33 = vadd.f32 %v2712_v60, %v990_v2  ;;  %v1118_v5 = vadd.f32 %v2716_v9, %v1086_v41  ;;  %v697_v24 = vpop.permute.xlu1 %696 }
 0x238   : > { %v3050_v49 = vsel %vm1445_vm9, %v4039_v46, %v2900_v15  ;;  %v1513_v8 = vmul.f32 %v2952_v4, %v1512_v44  ;;  %v1230_v30 = vadd.f32 %v4040_v20, %v1198_v31  ;;  %v750_v21 = vfloor.f32 %v734_v35  ;;  %vm3141_vm9 = vmand %vm1269_vm1, %vm2375_vm0 }
 0x239   : > { %v719_v27 = vsub.f32 %v697_v24, %v2466_v51  ;;  %v1038_v18 = vmul.f32 %v1022_v33, %v1022_v33  ;;  %v1134_v46 = vmul.f32 %v1118_v5, %v1118_v5  ;;  %v3062_v45 = vadd.s32 96, %v2624_v48 }
 0x23a   : > { %vm1527_vm3 = vcmp.eq.f32.partialorder %v2936_v26, inf  ;;  %v766_v60 = vsub.f32 %v718_v40, %v750_v21  ;;  %v4041_v9 = vand.u32 2147483648, %v2718_v6  ;;  %v4042_v44 = vand.u32 2147483648, %v2764_v55 }
 0x23b   : > { %v735_v2 = vadd.f32 0.5, %v719_v27  ;;  %v1525_v41 = vmul.f32 %v2974_v32, %v1524_v1  ;;  %v1534_v31 = vmul.f32 %v3025_v59, %v1533_v53  ;;  %v1150_v40 = vadd.f32 %v1134_v46, %v1038_v18  ;;  %v4045_v18 = vld [vmem:[#allocation47_spill] sm:$0xff] }
 0x23c   : > { %v1459_v4 = vsel %vm1457_vm11, %v4041_v9, %v2930_v57  ;;  %v3075_v35 = vsel %vm1481_vm12, %v4042_v44, %v2959_v12  ;;  %v1246_v33 = vmul.f32 %v1230_v30, %v1230_v30  ;;  %v3079_v5 = vpop.eup %2002  ;;  %v1514_v24 = vmul.f32 %v1513_v8, %v2884_v63  ;;  %v4044_v30 = vld [vmem:[#allocation45_spill] sm:$0xff]  ;;  %v4046_v44 = vld [vmem:[#allocation48_spill] sm:$0xff] }
 0x23d   : > { %v975_v57 = vmul.f32 %v766_v60, %v2339_v38  ;;  %v1071_v20 = vmul.f32 %v766_v60, %v2341_v39  ;;  %v1183_v21 = vmul.f32 %v766_v60, %v2333_v34  ;;  %v1545_v12 = vmul.f32 %v3079_v5, %v3023_v7  ;;  %v4047_v60 = vld [vmem:[#allocation38_spill] sm:$0xff] }
 0x23e   : > { %v3087_v9 = vadd.f32 %v1246_v33, %v1150_v40  ;;  %v751_v32 = vfloor.f32 %v735_v2  ;;  %v4043_v1 = vand.u32 2147483648, %v2808_v28  ;;  %vm1270_vm4 = vcmp.lt.s32.totalorder %v4047_v60, %v4038_v54 }
 0x23f   : > { %v991_v8 = vadd.f32 %v975_v57, %v4044_v30  ;;  %v1087_v46 = vadd.f32 %v1071_v20, %v4045_v18  ;;  %v1199_v15 = vadd.f32 %v1183_v21, %v4046_v44  ;;  %v4048_v40 = vand.u32 2147483648, %v2847_v3  ;;  %v702_v20 = vpop.permute.xlu1 %701  ;;  %v4049_v21 = vld [vmem:[#allocation57_spill] sm:$0xff]  ;;  %vm3185_vm12 = vmand %vm1270_vm4, %vm2375_vm0 }
 0x240   : > { %v3093_v53 = vsel %vm1493_vm13, %v4043_v1, %v1492_v58  ;;  %vm1517_vm5 = vcmp.eq.f32.partialorder %v2884_v63, 0.0  ;;  %v1526_v58 = vmul.f32 %v1525_v41, %v2936_v26  ;;  %v1535_v33 = vmul.f32 0.5, %v1534_v31 }
 0x241   : > { %v3107_v2 = vsel %vm1505_vm14, %v4048_v40, %v1504_v47  ;;  %v1546_v57 = vmul.f32 %v3079_v5, %v1545_v12  ;;  %2004 = vrsqrt.f32 %v3087_v9  ;;  %vm1271_vm6 = vcmp.lt.s32.totalorder %v4049_v21, %v4038_v54 }
 0x242   : > { %v1516_v1 = vsel %vm1515_vm2, %v2884_v63, %v1514_v24  ;;  %vm1529_vm7 = vcmp.eq.f32.partialorder %v2936_v26, 0.0  ;;  %v1023_v47 = vadd.f32 %v2920_v14, %v991_v8  ;;  %v1119_v41 = vadd.f32 %v2923_v42, %v1087_v46  ;;  %vm3204_vm14 = vmand %vm1271_vm6, %vm2375_vm0 }
 0x243   : > { %v3122_v31 = vadd.s32 104, %v2624_v48  ;;  %v4051_v30 = vmov 0  ;;  %v1547_v18 = vmul.f32 0.5, %v1546_v57  ;;  %v1231_v24 = vadd.f32 %v2943_v61, %v1199_v15 }
 0x244   : > { %v4052_v30 = vsel %vm3129_vm8, 4294967295, %v4051_v30  ;;  %v767_v44 = vsub.f32 %v719_v27, %v751_v32  ;;  %v720_v14 = vsub.f32 %v702_v20, %v2466_v51  ;;  %v4054_v42 = vmov 0 }
 0x245   : > { %4053 = vst [vmem:[#allocation36_spill] sm:$0xff] %v4052_v30  ;;  %v4055_v42 = vsel %vm3141_vm9, 4294967295, %v4054_v42  ;;  %v1039_v8 = vmul.f32 %v1023_v47, %v1023_v47  ;;  %v1135_v46 = vmul.f32 %v1119_v41, %v1119_v41  ;;  %v1606_v40 = vsel %vm3129_vm8, %v3050_v49, 0.0  ;;  %v4057_v49 = vld [vmem:[#allocation41_spill] sm:$0xff] }
 0x246   : > { %4056 = vst [vmem:[#allocation37_spill] sm:$0xff] %v4055_v42  ;;  %v1607_v61 = vsel %vm3141_vm9, %v1459_v4, 0.0  ;;  %v1528_v51 = vsel %vm1527_vm3, %v2936_v26, %v1526_v58  ;;  %v1536_v27 = vsub.f32 1.5, %v1535_v33  ;;  %v976_v15 = vmul.f32 %v767_v44, %v2339_v38  ;;  %v4058_v42 = vld [vmem:[#allocation43_spill] sm:$0xff]  ;;  %v4059_v33 = vld [vmem:[#allocation44_spill] sm:$0xff] }
 0x247   : > { %v1072_v32 = vmul.f32 %v767_v44, %v2341_v39  ;;  %v1151_v57 = vadd.f32 %v1135_v46, %v1039_v8  ;;  %v1247_v20 = vmul.f32 %v1231_v24, %v1231_v24  ;;  %v1184_v47 = vmul.f32 %v767_v44, %v2333_v34  ;;  %v2005_v23 = vpop.eup %2004  ;;  %v4060_v44 = vld [vmem:[#allocation51_spill] sm:$0xff]  ;;  %v804_v52 = vpop.permute.xlu1 %803 }
 0x248   : > { %v736_v41 = vadd.f32 0.5, %v720_v14  ;;  %v1548_v30 = vsub.f32 1.5, %v1547_v18  ;;  %v992_v3 = vadd.f32 %v976_v15, %v4057_v49  ;;  %v1868_v28 = vpack.c.bf16 %v1607_v61, %v1606_v40 }
 0x249   : > { %v1088_v4 = vadd.f32 %v1072_v32, %v4058_v42  ;;  %v1557_v55 = vmul.f32 %v2005_v23, %v3087_v9  ;;  %v3159_v58 = vadd.f32 %v1247_v20, %v1151_v57  ;;  %v1200_v6 = vadd.f32 %v1184_v47, %v4059_v33  ;;  %v4067_v20 = vld [vmem:[#allocation27_spill] sm:$0xff] }
 0x24a   : > { %v752_v16 = vfloor.f32 %v736_v41  ;;  %v1537_v8 = vmul.f32 %v3025_v59, %v1536_v27  ;;  %v1542_v24 = vand.u32 2147483648, %v2990_v11  ;;  %v1024_v46 = vadd.f32 %v4060_v44, %v992_v3  ;;  %1900 = vst [vmem:[%s3166_s7 + $0x8] sm:$0xff] %v1868_v28  }
 0x24b   : > { %v1120_v18 = vadd.f32 %v4061_v56, %v1088_v4  ;;  %vm1539_vm10 = vcmp.eq.f32.partialorder %v2990_v11, inf  ;;  %v1554_v42 = vand.u32 2147483648, %v3023_v7  ;;  %v1558_v40 = vmul.f32 %v2005_v23, %v1557_v55 }
 0x24c   : > { %2006 = vrsqrt.f32 %v3159_v58  ;;  %v4062_v59 = vand.u32 2147483648, %v2884_v63  ;;  %v1549_v56 = vmul.f32 %v3079_v5, %v1548_v30  ;;  %vm1551_vm11 = vcmp.eq.f32.partialorder %v3023_v7, inf  ;;  %v4066_v30 = vld [vmem:[#allocation53_spill] sm:$0xff] }
 0x24d   : > { %v1040_v3 = vmul.f32 %v1024_v46, %v1024_v46  ;;  %v1136_v27 = vmul.f32 %v1120_v18, %v1120_v18  ;;  %v4063_v55 = vmov 0  ;;  %v4065_v28 = vand.u32 2147483648, %v2936_v26 }
 0x24e   : > { %v3176_v61 = vsel %vm1517_vm5, %v4062_v59, %v1516_v1  ;;  %v4064_v55 = vsel %vm3185_vm12, 4294967295, %v4063_v55  ;;  %v1559_v5 = vmul.f32 0.5, %v1558_v40  ;;  %v1232_v15 = vadd.f32 %v4066_v30, %v1200_v6 }
 0x24f   : > { %v3193_v1 = vsel %vm1529_vm7, %v4065_v28, %v1528_v51  ;;  %v768_v32 = vsub.f32 %v720_v14, %v752_v16  ;;  %v882_v57 = vsub.f32 %v804_v52, %v2442_v22  ;;  %vm1272_vm13 = vcmp.lt.s32.totalorder %v4067_v20, %v4038_v54 }
 0x250   : > { %v4068_v47 = vmov 0  ;;  %v1538_v51 = vmul.f32 %v1537_v8, %v2990_v11  ;;  %v1152_v41 = vadd.f32 %v1136_v27, %v1040_v3  ;;  %vm1273_vm15 = vcmp.lt.s32.totalorder %v2917_v50, %v4038_v54  ;;  %v4071_v3 = vld [vmem:[#allocation25_spill] sm:$0xff] }
 0x251   : > { %v4069_v47 = vsel %vm3204_vm14, 4294967295, %v4068_v47  ;;  %v1608_v22 = vsel %vm3185_vm12, %v2838_v0, 0.0  ;;  %v1609_v16 = vsel %vm3204_vm14, %v3075_v35, 0.0  ;;  %vm1541_vm1 = vcmp.eq.f32.partialorder %v2990_v11, 0.0  ;;  %v4070_v35 = vld [vmem:[#allocation24_spill] sm:$0xff] }
 0x252   : > { %v1560_v6 = vsub.f32 1.5, %v1559_v5  ;;  %v1248_v52 = vmul.f32 %v1232_v15, %v1232_v15  ;;  %v977_v14 = vmul.f32 %v768_v32, %v2339_v38  ;;  %v1073_v49 = vmul.f32 %v768_v32, %v2341_v39  ;;  %v2007_v44 = vpop.eup %2006 }
 0x253   : > { %vm1274_vm2 = vcmp.lt.s32.totalorder %v2947_v62, %v4038_v54  ;;  %v1550_v4 = vmul.f32 %v1549_v56, %v3023_v7  ;;  %vm1553_vm3 = vcmp.eq.f32.partialorder %v3023_v7, 0.0  ;;  %v1185_v0 = vmul.f32 %v768_v32, %v2333_v34 }
 0x254   : > { %v898_v33 = vadd.f32 0.5, %v882_v57  ;;  %v1873_v8 = vpack.c.bf16 %v1609_v16, %v1608_v22  ;;  %v1561_v46 = vmul.f32 %v2005_v23, %v1560_v6  ;;  %v3227_v38 = vadd.f32 %v1248_v52, %v1152_v41  ;;  %v4072_v22 = vld [vmem:[#allocation17_spill] sm:$0xff] }
 0x255   : > { %v993_v39 = vadd.f32 %v977_v14, %v3021_v19  ;;  %v1089_v18 = vadd.f32 %v1073_v49, %v3029_v43  ;;  %vm1563_vm6 = vcmp.eq.f32.partialorder %v3087_v9, inf  ;;  %v1569_v34 = vmul.f32 %v2007_v44, %v3159_v58 }
 0x256   : > { %v1201_v40 = vadd.f32 %v1185_v0, %v3040_v17  ;;  %v914_v59 = vfloor.f32 %v898_v33  ;;  %1901 = vst [vmem:[%s3166_s7 + $0x10] sm:$0xff] %v1873_v8   ;;  %v1562_v23 = vmul.f32 %v1561_v46, %v3087_v9  ;;  %v1566_v19 = vand.u32 2147483648, %v3087_v9  ;;  %v4075_v0 = vld [vmem:[#allocation30_spill] sm:$0xff]  ;;  %v4076_v33 = vld [vmem:[#allocation31_spill] sm:$0xff]  ;;  %v4077_v46 = vld [vmem:[#allocation32_spill] sm:$0xff] }
 0x257   : > { %2008 = vrsqrt.f32 %v3227_v38  ;;  %v1540_v43 = vsel %vm1539_vm10, %v2990_v11, %v1538_v51  ;;  %v1570_v56 = vmul.f32 %v2007_v44, %v1569_v34  ;;  %v1025_v17 = vadd.f32 %v4071_v3, %v993_v39 }
 0x258   : > { %v1121_v27 = vadd.f32 %v2983_v10, %v1089_v18  ;;  %vm1279_vm7 = vcmp.lt.s32.totalorder %v3122_v31, %v4038_v54  ;;  %v1552_v28 = vsel %vm1551_vm11, %v3023_v7, %v1550_v4  ;;  %vm1575_vm5 = vcmp.eq.f32.partialorder %v3159_v58, inf  ;;  %vm3270_vm11 = vmand %vm1272_vm13, %vm2375_vm0 }
 0x259   : > { %v1233_v5 = vadd.f32 %v2995_v29, %v1201_v40  ;;  %v930_v30 = vsub.f32 %v882_v57, %v914_v59  ;;  %v1571_v15 = vmul.f32 0.5, %v1570_v56  ;;  %vm1577_vm4 = vcmp.eq.f32.partialorder %v3159_v58, 0.0  ;;  %vm3286_vm13 = vmand %vm1273_vm15, %vm2375_vm0 }
 0x25a   : > { %v1578_v10 = vand.u32 2147483648, %v3159_v58  ;;  %v1041_v32 = vmul.f32 %v1025_v17, %v1025_v17  ;;  %v1137_v51 = vmul.f32 %v1121_v27, %v1121_v27  ;;  %v1564_v41 = vsel %vm1563_vm6, %v3087_v9, %v1562_v23 }
 0x25b   : > { %v994_v16 = vmul.f32 %v930_v30, %v4072_v22  ;;  %v1090_v6 = vmul.f32 %v930_v30, %v2335_v36  ;;  %v1202_v29 = vmul.f32 %v930_v30, %v2337_v37  ;;  %v1572_v57 = vsub.f32 1.5, %v1571_v15 }
 0x25c   : > { %v1153_v52 = vadd.f32 %v1137_v51, %v1041_v32  ;;  %v1249_v14 = vmul.f32 %v1233_v5, %v1233_v5  ;;  %v4073_v49 = vmov 0  ;;  %v1543_v4 = vsel %vm1541_vm1, %v1542_v24, %v1540_v43  ;;  %vm3302_vm1 = vmand %vm1274_vm2, %vm2375_vm0 }
 0x25d   : > { %v4074_v49 = vsel %vm3270_vm11, 4294967295, %v4073_v49  ;;  %v2009_v36 = vpop.eup %2008  ;;  %v1010_v37 = vadd.f32 %v994_v16, %v4075_v0  ;;  %v1106_v8 = vadd.f32 %v1090_v6, %v4076_v33  ;;  %v1218_v39 = vadd.f32 %v1202_v29, %v4077_v46 }
 0x25e   : > { %v4078_v18 = vmov 0  ;;  %v1555_v24 = vsel %vm1553_vm3, %v1554_v42, %v1552_v28  ;;  %v1573_v34 = vmul.f32 %v2007_v44, %v1572_v57  ;;  %v1581_v40 = vmul.f32 %v2009_v36, %v3227_v38 }
 0x25f   : > { %v4079_v18 = vsel %vm3286_vm13, 4294967295, %v4078_v18  ;;  %v3295_v59 = vadd.f32 %v1249_v14, %v1153_v52  ;;  %v4080_v23 = vmov 0  ;;  %vm4082_vm15 = vcmp.eq.f32.partialorder %v3087_v9, 0.0  ;;  %v4094_v52 = vld [vmem:[#allocation42_spill] sm:$0xff]  ;;  %v4095_v14 = vld [vmem:[#allocation23_spill] sm:$0xff] }
 0x260   : > { %v4081_v23 = vsel %vm3302_vm1, 4294967295, %v4080_v23  ;;  %v1567_v43 = vsel %vm4082_vm15, %v1566_v19, %v1564_v41  ;;  %v1026_v56 = vmul.f32 %v1010_v37, %v1010_v37  ;;  %v1122_v3 = vmul.f32 %v1106_v8, %v1106_v8 }
 0x261   : > { %vm4083_vm3 = vcmp.lt.s32.totalorder %v4070_v35, %v4038_v54  ;;  %v4084_v42 = vmov 0  ;;  %v1610_v44 = vsel %vm3270_vm11, %v3093_v53, 0.0  ;;  %v1611_v17 = vsel %vm3286_vm13, %v3107_v2, 0.0 }
 0x262   : > { %vm3313_vm6 = vmand %vm4083_vm3, %vm2375_vm0  ;;  %v1574_v19 = vmul.f32 %v1573_v34, %v3159_v58  ;;  %v1582_v27 = vmul.f32 %v2009_v36, %v1581_v40  ;;  %2010 = vrsqrt.f32 %v3295_v59  ;;  %vm4086_vm2 = vcmp.lt.s32.totalorder %v3014_v25, %v4038_v54 }
 0x263   : > { %v4085_v42 = vsel %vm3313_vm6, 4294967295, %v4084_v42  ;;  %vm3330_vm15 = vmand %vm4086_vm2, %vm2375_vm0  ;;  %v4087_v28 = vmov 0  ;;  %v1613_v53 = vsel %vm3313_vm6, %v3193_v1, 0.0  ;;  %v1138_v5 = vadd.f32 %v1122_v3, %v1026_v56  ;;  %v4099_v56 = vld [vmem:[#allocation18_spill] sm:$0xff] }
 0x264   : > { %v4088_v28 = vsel %vm3330_vm15, 4294967295, %v4087_v28  ;;  %v1234_v2 = vmul.f32 %v1218_v39, %v1218_v39  ;;  %vm4089_vm3 = vcmp.lt.s32.totalorder %v3002_v13, %v4038_v54  ;;  %v4090_v30 = vmov 0  ;;  %vm3363_vm2 = vmand %vm1279_vm7, %vm2375_vm0 }
 0x265   : > { %vm3342_vm10 = vmand %vm4089_vm3, %vm2375_vm0  ;;  %v1612_v15 = vsel %vm3302_vm1, %v3176_v61, 0.0  ;;  %v1615_v32 = vsel %vm3330_vm15, %v1555_v24, 0.0  ;;  %v1576_v1 = vsel %vm1575_vm5, %v3159_v58, %v1574_v19  ;;  %v1583_v51 = vmul.f32 0.5, %v1582_v27 }
 0x266   : > { %v4091_v30 = vsel %vm3342_vm10, 4294967295, %v4090_v30  ;;  %v1614_v41 = vsel %vm3342_vm10, %v1543_v4, 0.0  ;;  %v1878_v22 = vpack.c.bf16 %v1611_v17, %v1610_v44  ;;  %v3356_v16 = vadd.f32 %v1234_v2, %v1138_v5 }
 0x267   : > { %v4092_v61 = vmov 0  ;;  %v1579_v6 = vsel %vm1577_vm4, %v1578_v10, %v1576_v1  ;;  %v1883_v29 = vpack.c.bf16 %v1613_v53, %v1612_v15  ;;  %v1888_v57 = vpack.c.bf16 %v1615_v32, %v1614_v41  ;;  %v4102_v15 = vld [vmem:[#allocation54_spill] sm:$0xff]  ;;  %v4103_v1 = vld [vmem:[#allocation56_spill] sm:$0xff] }
 0x268   : > { %v4093_v61 = vsel %vm3363_vm2, 4294967295, %v4092_v61  ;;  %v1430_v4 = vmul.f32 %v4095_v14, %v4094_v52  ;;  %v1584_v0 = vsub.f32 1.5, %v1583_v51  ;;  %vm4096_vm5 = vcmp.lt.s32.totalorder %v3062_v45, %v4038_v54  ;;  %1902 = vst [vmem:[%s3166_s7 + $0x18] sm:$0xff] %v1878_v22   ;;  %v2011_v8 = vpop.eup %2010 }
 0x269   : > { %vm3376_vm3 = vmand %vm4096_vm5, %vm2375_vm0  ;;  %v4097_v37 = vmov 0  ;;  %v1617_v33 = vsel %vm3363_vm2, %v1579_v6, 0.0  ;;  %2012 = vrsqrt.f32 %v3356_v16  ;;  %1903 = vst [vmem:[%s3166_s7 + $0x20] sm:$0xff] %v1883_v29   ;;  %vm1431_vm4 = vcmp.eq.f32.partialorder %v4094_v52, inf }
 0x26a   : > { %v4098_v37 = vsel %vm3376_vm3, 4294967295, %v4097_v37  ;;  %v1616_v10 = vsel %vm3376_vm3, %v1567_v43, 0.0  ;;  %v3389_v46 = vadd.s32 8, %v2624_v48  ;;  %1904 = vst [vmem:[%s3166_s7 + $0x28] sm:$0xff] %v1888_v57   ;;  %v1585_v24 = vmul.f32 %v2009_v36, %v1584_v0 }
 0x26b   : > { %v1893_v39 = vpack.c.bf16 %v1617_v33, %v1616_v10  ;;  %v1593_v34 = vmul.f32 %v2011_v8, %v3295_v59  ;;  %v3394_v40 = vadd.s32 112, %v2624_v48  ;;  %vm298_vm7 = vcmp.ne.s32.totalorder %v2624_v48, %v4099_v56 }
 0x26c   : > { %v1432_v43 = vsel %vm1431_vm4, %v4094_v52, %v1430_v4  ;;  %v3400_v3 = vadd.s32 120, %v2624_v48  ;;  %v1434_v44 = vand.u32 2147483648, %v4094_v52  ;;  %vm1332_vm5 = vcmp.le.f32.partialorder %v3356_v16, 9.0 }
 0x26d   : > { %1905 = vst [vmem:[%s3166_s7 + $0x30] sm:$0xff] %v1893_v39   ;;  %v1594_v17 = vmul.f32 %v2011_v8, %v1593_v34  ;;  %vm1433_vm2 = vcmp.eq.f32.partialorder %v4094_v52, 0.0  ;;  %vm3408_vm15 = vmand %vm1332_vm5, %vm298_vm7  ;;  %v4100_v36 = vmov 0  ;;  %v1586_v27 = vmul.f32 %v1585_v24, %v3227_v38  ;;  %v4114_v39 = vld [vmem:[#allocation46_spill] sm:$0xff]  ;;  %v4115_v24 = vld [vmem:[#allocation49_spill] sm:$0xff] }
 0x26e   : > { %v4101_v36 = vsel %vm3408_vm15, 4294967295, %v4100_v36  ;;  %v3415_v5 = vsel %vm1433_vm2, %v1434_v44, %v1432_v43  ;;  %vm1587_vm6 = vcmp.eq.f32.partialorder %v3227_v38, inf  ;;  %v1590_v22 = vand.u32 2147483648, %v3227_v38  ;;  %v4120_v44 = vld [vmem:[#allocation22_spill] sm:$0xff] }
 0x26f   : > { %v2013_v19 = vpop.eup %2012  ;;  %v1595_v53 = vmul.f32 0.5, %v1594_v17  ;;  %v1588_v41 = vsel %vm1587_vm6, %v3227_v38, %v1586_v27  ;;  %v1602_v29 = vand.u32 2147483648, %v3295_v59  ;;  %vm4104_vm6 = vcmp.lt.s32.totalorder %v3389_v46, %v4038_v54  ;;  %v4121_v17 = vld [vmem:[#allocation55_spill] sm:$0xff] }
 0x270   : > { %v1413_v2 = vmul.f32 %v2013_v19, %v3356_v16  ;;  %vm3446_vm7 = vmand %vm4104_vm6, %vm2375_vm0  ;;  %vm4107_vm4 = vcmp.lt.s32.totalorder %v3394_v40, %v4038_v54  ;;  %v4108_v0 = vmov 0  ;;  %vm4110_vm10 = vcmp.lt.s32.totalorder %v3400_v3, %v4038_v54 }
 0x271   : > { %v1596_v32 = vsub.f32 1.5, %v1595_v53  ;;  %vm3455_vm3 = vmand %vm4107_vm4, %vm2375_vm0  ;;  %v4111_v10 = vmov 0  ;;  %vm4113_vm1 = vcmp.eq.f32.partialorder %v3227_v38, 0.0  ;;  %vm4116_vm6 = vcmp.eq.f32.partialorder %v3295_v59, inf }
 0x272   : > { %v1414_v51 = vmul.f32 %v2013_v19, %v1413_v2  ;;  %v4109_v0 = vsel %vm3455_vm3, 4294967295, %v4108_v0  ;;  %vm3471_vm4 = vmand %vm4110_vm10, %vm2375_vm0  ;;  %vm4117_vm13 = vcmp.lt.s32.totalorder %v2624_v48, %v4038_v54  ;;  %v4118_v43 = vmov 0  ;;  %v4123_v48 = vld [vmem:[#allocation58_spill] sm:$0xff]  ;;  %v4124_v54 = vld [vmem:[#allocation59_spill] sm:$0xff] }
 0x273   : > { %v1597_v6 = vmul.f32 %v2011_v8, %v1596_v32  ;;  %v4112_v10 = vsel %vm3471_vm4, 4294967295, %v4111_v10  ;;  %v1591_v8 = vsel %vm4113_vm1, %v1590_v22, %v1588_v41  ;;  %vm3487_vm10 = vmand %vm4117_vm13, %vm2375_vm0  ;;  %vm4122_vm11 = vcmp.eq.f32.partialorder %v3295_v59, 0.0 }
 0x274   : > { %v1415_v57 = vmul.f32 0.5, %v1414_v51  ;;  %v4119_v43 = vsel %vm3487_vm10, 4294967295, %v4118_v43  ;;  %vm4126_vm1 = vcmp.le.f32.partialorder %v4094_v52, 9.0  ;;  %v4127_v12 = vmov 0 }
 0x275   : > { %v1598_v14 = vmul.f32 %v1597_v6, %v3295_v59  ;;  %vm4129_vm0 = vcmp.ne.s32.totalorder %v4102_v15, %v4099_v56  ;;  %vm4130_vm2 = vcmp.le.f32.partialorder %v4114_v39, 9.0  ;;  %v4131_v52 = vmov 0 }
 0x276   : > { %v1416_v33 = vsub.f32 1.5, %v1415_v57  ;;  %v4139_v15 = vmov 0  ;;  %v1422_v41 = vand.u32 2147483648, %v3356_v16  ;;  %vm4145_vm13 = vcmp.ne.s32.totalorder %v4067_v20, %v4099_v56 }
 0x277   : > { %v1600_v34 = vsel %vm4116_vm6, %v3295_v59, %v1598_v14  ;;  %vm4125_vm6 = vcmp.ne.s32.totalorder %v3389_v46, %v4099_v56  ;;  %v4135_v46 = vmov 0  ;;  %v4159_v20 = vmov 0 }
 0x278   : > { %v1417_v27 = vmul.f32 %v2013_v19, %v1416_v33  ;;  %v1603_v53 = vsel %vm4122_vm11, %v1602_v29, %v1600_v34  ;;  %vm3509_vm5 = vmand %vm4126_vm1, %vm4125_vm6  ;;  %v1618_v19 = vsel %vm3455_vm3, %v1591_v8, 0.0  ;;  %vm4133_vm6 = vcmp.ne.s32.totalorder %v4103_v1, %v4099_v56 }
 0x279   : > { %v4128_v12 = vsel %vm3509_vm5, 4294967295, %v4127_v12  ;;  %v1619_v2 = vsel %vm3471_vm4, %v1603_v53, 0.0  ;;  %vm3524_vm1 = vmand %vm4130_vm2, %vm4129_vm0  ;;  %vm4134_vm3 = vcmp.le.f32.partialorder %v4115_v24, 9.0  ;;  %vm4137_vm0 = vcmp.ne.s32.totalorder %v4047_v60, %v4099_v56 }
 0x27a   : > { %v4132_v52 = vsel %vm3524_vm1, 4294967295, %v4131_v52  ;;  %vm3533_vm14 = vmand %vm4134_vm3, %vm4133_vm6  ;;  %v1418_v32 = vmul.f32 %v1417_v27, %v3356_v16  ;;  %v1898_v51 = vpack.c.bf16 %v1619_v2, %v1618_v19  ;;  %vm4138_vm11 = vcmp.le.f32.partialorder %v4120_v44, 9.0 }
 0x27b   : > { %v4136_v46 = vsel %vm3533_vm14, 4294967295, %v4135_v46  ;;  %vm3546_vm4 = vmand %vm4138_vm11, %vm4137_vm0  ;;  %vm4141_vm3 = vcmp.ne.s32.totalorder %v4049_v21, %v4099_v56  ;;  %vm4142_vm6 = vcmp.le.f32.partialorder %v4121_v17, 9.0  ;;  %v4143_v1 = vmov 0 }
 0x27c   : > { %v4140_v15 = vsel %vm3546_vm4, 4294967295, %v4139_v15  ;;  %vm3555_vm12 = vmand %vm4142_vm6, %vm4141_vm3  ;;  %vm1419_vm2 = vcmp.eq.f32.partialorder %v3356_v16, inf  ;;  %vm4146_vm4 = vcmp.le.f32.partialorder %v4123_v48, 9.0  ;;  %v4147_v60 = vmov 0  ;;  %1906 = vst [vmem:[%s3166_s7 + $0x38] sm:$0xff] %v1898_v51  }
 0x27d   : > { %v4144_v1 = vsel %vm3555_vm12, 4294967295, %v4143_v1  ;;  %vm3571_vm3 = vmand %vm4146_vm4, %vm4145_vm13  ;;  %vm4149_vm6 = vcmp.ne.s32.totalorder %v2917_v50, %v4099_v56  ;;  %vm4150_vm12 = vcmp.le.f32.partialorder %v4124_v54, 9.0  ;;  %v4151_v21 = vmov 0 }
 0x27e   : > { %v4148_v60 = vsel %vm3571_vm3, 4294967295, %v4147_v60  ;;  %vm3580_vm14 = vmand %vm4150_vm12, %vm4149_vm6  ;;  %v1420_v22 = vsel %vm1419_vm2, %v3356_v16, %v1418_v32  ;;  %vm1421_vm0 = vcmp.eq.f32.partialorder %v3356_v16, 0.0  ;;  %vm4153_vm11 = vcmp.ne.s32.totalorder %v2947_v62, %v4099_v56 }
 0x27f   : > { %v4152_v21 = vsel %vm3580_vm14, 4294967295, %v4151_v21  ;;  %vm4154_vm3 = vcmp.le.f32.partialorder %v2884_v63, 9.0  ;;  %v4155_v50 = vmov 0  ;;  %vm4157_vm12 = vcmp.ne.s32.totalorder %v4070_v35, %v4099_v56 }
 0x280   : > { %vm3595_vm9 = vmand %vm4154_vm3, %vm4153_vm11  ;;  %vm4158_vm2 = vcmp.le.f32.partialorder %v2936_v26, 9.0  ;;  %v1423_v16 = vsel %vm1421_vm0, %v1422_v41, %v1420_v22  ;;  %vm311_vm13 = vcmp.ne.s32.totalorder %v3122_v31, %v4099_v56  ;;  %vm1345_vm4 = vcmp.le.f32.partialorder %v3159_v58, 9.0 }
 0x281   : > { %v4156_v50 = vsel %vm3595_vm9, 4294967295, %v4155_v50  ;;  %vm3604_vm6 = vmand %vm4158_vm2, %vm4157_vm12  ;;  %vm4161_vm11 = vcmp.ne.s32.totalorder %v3002_v13, %v4099_v56  ;;  %vm4162_vm3 = vcmp.le.f32.partialorder %v2990_v11, 9.0  ;;  %v4163_v63 = vmov 0 }
 0x282   : > { %v4160_v20 = vsel %vm3604_vm6, 4294967295, %v4159_v20  ;;  %vm3616_vm9 = vmand %vm4162_vm3, %vm4161_vm11  ;;  %v1604_v26 = vsel %vm3487_vm10, %v1423_v16, 0.0  ;;  %v1605_v62 = vsel %vm3446_vm7, %v3415_v5, 0.0  ;;  %vm312_vm0 = vcmp.ne.s32.totalorder %v3394_v40, %v4099_v56 }
 0x283   : > { %v4164_v63 = vsel %vm3616_vm9, 4294967295, %v4163_v63  ;;  %vm1346_vm12 = vcmp.le.f32.partialorder %v3227_v38, 9.0  ;;  %vm4165_vm2 = vcmp.ne.s32.totalorder %v3014_v25, %v4099_v56  ;;  %vm4166_vm11 = vcmp.le.f32.partialorder %v3023_v7, 9.0  ;;  %vm3653_vm5 = vmand %vm1345_vm4, %vm311_vm13 }
 0x284   : > { %vm3637_vm3 = vmand %vm4166_vm11, %vm4165_vm2  ;;  %v4167_v11 = vmov 0  ;;  %v1863_v13 = vpack.c.bf16 %v1605_v62, %v1604_v26  ;;  %vm313_vm9 = vcmp.ne.s32.totalorder %v3400_v3, %v4099_v56  ;;  %vm1347_vm6 = vcmp.le.f32.partialorder %v3295_v59, 9.0 }
 0x285   : > { %v4168_v11 = vsel %vm3637_vm3, 4294967295, %v4167_v11  ;;  %vm4169_vm14 = vcmp.ne.s32.totalorder %v3062_v45, %v4099_v56  ;;  %vm4170_vm1 = vcmp.le.f32.partialorder %v3087_v9, 9.0  ;;  %v4171_v31 = vmov 0  ;;  %vm3658_vm2 = vmand %vm1346_vm12, %vm312_vm0 }
 0x286   : > { %vm3649_vm8 = vmand %vm4170_vm1, %vm4169_vm14  ;;  %v4173_v25 = vmov 0  ;;  %1864 = vst [vmem:[%s3166_s7] sm:$0xff] %v1863_v13   ;;  %v4175_v7 = vmov 0 }
 0x287   : > { %v4172_v31 = vsel %vm3649_vm8, 4294967295, %v4171_v31  ;;  %v4174_v25 = vsel %vm3653_vm5, 4294967295, %v4173_v25  ;;  %v4176_v7 = vsel %vm3658_vm2, 4294967295, %v4175_v7 }
 0x288   : > { %2083 = shalt.err (!%p2080_p8)
}
 0x289   : > { %s2166_s12 = smov 64   ;;  %s2167_s7 = smov 4   ;;  %vm3681_vm14 = vmand %vm1347_vm6, %vm313_vm9  ;;  %v4177_v45 = vmov 0  ;;  %v4180_v9 = vld [vmem:[#allocation36_spill] sm:$0xff]  ;;  %v4183_v58 = vld [vmem:[#allocation37_spill] sm:$0xff]  ;;  %vm4185_vm6 = vnez %v4136_v46  ;;  %vm4191_vm11 = vnez %v4148_v60  ;;  %vm4209_vm4 = vnez %v4101_v36 }
 0x28a   : > { %1915 = dma.vmem_to_hbm [thread:$0]  (%p2246_p5), %s3625_s14, 1024, %s3627_s23, %s1657_s29, %s2166_s12, %s2166_s12, %s2167_s7   ;;  %v4178_v45 = vsel %vm3681_vm14, 4294967295, %v4177_v45  ;;  %vm4181_vm0 = vnez %v4180_v9  ;;  %vm4184_vm9 = vnez %v4183_v58  ;;  %vm4210_vm3 = vnez %v4119_v43 }
 0x28b   : > { %vm1367_vm14 = vmand %vm4185_vm6, %vm4184_vm9  ;;  %vm4208_vm13 = vnez %v4178_v45  ;;  %vm4212_vm12 = vnez %v4128_v12  ;;  %vm4215_vm1 = vnez %v4132_v52  ;;  %v4217_v35 = vmov 0   ;;  %s1859_s15 = sshll.u32 %s2229_s0, 5  ;;  %s1847_s19 = sshll.u32 %s3099_s21, 5 }
 0x28c   : > { %vm4211_vm2 = vmand %vm4209_vm4, %vm4210_vm3  ;;  %vm4218_vm3 = vnez %v4140_v15  ;;  %vm4219_vm4 = vnez %v4064_v55  ;;  %s1693_s8 = scalar_lea.hbm %s3875_s6, %s1859_s15  ;;  %s268_s14 = scalar_lea.vmem [#allocation10], %s1847_s19 }
 0x28d   : > { %vm4213_vm9 = vmmov %vm3446_vm7  ;;  %s1694_s23 = sshll.u32 %s268_s14, 4  ;;  %s1696_s29 = sshll.u32 %s1693_s8, 4  ;;  %s1695_s23 = int_to_ptr.vmem [resolvable:$true] %s1694_s23  ;;  %s1697_s29 = int_to_ptr.hbm [resolvable:$true] %s1696_s29 }
 0x28e   : > { %vm4214_vm7 = vmand %vm4212_vm12, %vm4213_vm9  ;;  %vm4221_vm12 = vnez %v4144_v1  ;;  %s1662_s18 = scalar_lea.sflag [#allocation11], %s3099_s21  ;;  %s2098_s24 = sshra.s32 %s1697_s29, 4  ;;  %s2099_s24 = int_to_ptr.hbm [resolvable:$true] %s2098_s24 }
 0x28f   : > { %vm1380_vm15 = vmpackc.low %vm4214_vm7, %vm4211_vm2  ;;  %vm4222_vm7 = vnez %v4069_v47  ;;  %s2100_s22 = scalar_lea.hbm %s2099_s24, 32  ;;  %s2104_s16 = scalar_lea.hbm %s3875_s6, 64 }
 0x290   : > { %vm4216_vm5 = vmand %vm4215_vm1, %vm4181_vm0  ;;  %v1382_v38 = vsel %vm1380_vm15, 16711935, %v4217_v35  ;;  %vm4224_vm15 = vnez %v4074_v49  ;;  %p2101_p9 = scmp.ne.s32.totalorder %s2099_s24, %s2100_s22  ;;  %p2105_p12 = scmp.lt.s32.totalorder %s2099_s24, %s3875_s6 }
 0x291   : > { %vm1381_vm8 = vmpackc.low %vm1367_vm14, %vm4216_vm5  ;;  %vm4226_vm14 = vnez %v4152_v21  ;;  %p2106_p13 = scmp.lt.s32.totalorder %s2104_s16, %s2100_s22 }
 0x292   : > { %v1383_v59 = vsel %vm1381_vm8, 16711935, %v4217_v35  ;;  %vm4220_vm6 = vmand %vm4218_vm3, %vm4219_vm4  ;;  %vm4227_vm8 = vnez %v4079_v18  ;;  %vm4229_vm3 = vnez %v4156_v50  ;;  %p2102_p10 = pnand %p2101_p9, %p2246_p5 }
 0x293   : > { %vm4223_vm2 = vmand %vm4221_vm12, %vm4222_vm7  ;;  %v1384_v40 = vpack.c.b8 %v1383_v59, %v1382_v38  ;;  %vm4232_vm12 = vnez %v4160_v20  ;;  %vm4233_vm7 = vnez %v4085_v42  ;;  %p2107_p0 = por %p2106_p13, %p2105_p12 }
 0x294   : > { %vm1386_vm9 = vmpackc.low %vm4223_vm2, %vm4220_vm6  ;;  %vm4230_vm6 = vnez %v4081_v23  ;;  %p2103_p11 = pneg %p2102_p10 }
 0x295   : > { %vm4225_vm5 = vmand %vm4191_vm11, %vm4224_vm15  ;;  %v1388_v55 = vsel %vm1386_vm9, 16711935, %v4217_v35  ;;  %vm1385_vm15 = vnez %v1384_v40  ;;  %vm4235_vm9 = vnez %v4164_v63 }
 0x296   : > { %vm4228_vm1 = vmand %vm4226_vm14, %vm4227_vm8  ;;  %vm4238_vm8 = vnez %v4168_v11  ;;  %v1404_v23 = vsel %vm1385_vm15, 16843009, %v4217_v35  ;;  %p2108_p1 = pnand %p2107_p0, %p2103_p11 }
 0x297   : > { %vm1387_vm0 = vmpackc.low %vm4228_vm1, %vm4225_vm5  ;;  %vm4236_vm5 = vnez %v4091_v30  ;;  %vm4239_vm1 = vnez %v4088_v28  ;;  %1408 = vst [vmem:[%s268_s14] sm:$0xff] %v1404_v23 }
 0x298   : > { %v1389_v56 = vsel %vm1387_vm0, 16711935, %v4217_v35  ;;  %vm4231_vm4 = vmand %vm4229_vm3, %vm4230_vm6  ;;  %vm4241_vm6 = vnez %v4172_v31 }
 0x299   : > { %vm4234_vm11 = vmand %vm4232_vm12, %vm4233_vm7  ;;  %v1390_v47 = vpack.c.b8 %v1389_v56, %v1388_v55  ;;  %vm4244_vm7 = vnez %v4174_v25 }
 0x29a   : > { %vm1392_vm2 = vmpackc.low %vm4234_vm11, %vm4231_vm4  ;;  %vm4242_vm4 = vnez %v4098_v37  ;;  %vm4245_vm11 = vnez %v4093_v61 }
 0x29b   : > { %vm4237_vm14 = vmand %vm4235_vm9, %vm4236_vm5  ;;  %v1394_v49 = vsel %vm1392_vm2, 16711935, %v4217_v35  ;;  %vm1391_vm10 = vnez %v1390_v47  ;;  %vm4248_vm2 = vnez %v4109_v0 }
 0x29c   : > { %vm4240_vm0 = vmand %vm4238_vm8, %vm4239_vm1  ;;  %vm4250_vm1 = vnez %v4112_v10  ;;  %v1405_v61 = vsel %vm1391_vm10, 16843009, %v4217_v35 }
 0x29d   : > { %vm1393_vm3 = vmpackc.low %vm4240_vm0, %vm4237_vm14  ;;  %vm4247_vm14 = vnez %v4176_v7  ;;  %1409 = vst [vmem:[%s268_s14 + $0x8] sm:$0xff] %v1405_v61 }
 0x29e   : > { %v1395_v18 = vsel %vm1393_vm3, 16711935, %v4217_v35  ;;  %vm4243_vm12 = vmand %vm4241_vm6, %vm4242_vm4 }
 0x29f   : > { %vm4246_vm9 = vmand %vm4244_vm7, %vm4245_vm11  ;;  %v1396_v42 = vpack.c.b8 %v1395_v18, %v1394_v49 }
 0x2a0   : > { %vm1398_vm5 = vmpackc.low %vm4246_vm9, %vm4243_vm12 }
 0x2a1   : > { %vm4249_vm8 = vmand %vm4247_vm14, %vm4248_vm2  ;;  %v1400_v28 = vsel %vm1398_vm5, 16711935, %v4217_v35  ;;  %vm1397_vm15 = vnez %v1396_v42 }
 0x2a2   : > { %vm4251_vm0 = vmand %vm4208_vm13, %vm4250_vm1  ;;  %v1406_v3 = vsel %vm1397_vm15, 16843009, %v4217_v35 }
 0x2a3   : > { %vm1399_vm3 = vmpackc.low %vm4251_vm0, %vm4249_vm8  ;;  %1410 = vst [vmem:[%s268_s14 + $0x10] sm:$0xff] %v1406_v3 }
 0x2a4   : > { %v1401_v30 = vsel %vm1399_vm3, 16711935, %v4217_v35 }
 0x2a5   : > { %v1402_v37 = vpack.c.b8 %v1401_v30, %v1400_v28 }
 0x2a7   : > { %vm1403_vm13 = vnez %v1402_v37 }
 0x2a8   : > { %v1407_v36 = vsel %vm1403_vm13, 16843009, %v4217_v35 }
 0x2a9   : > { %1411 = vst [vmem:[%s268_s14 + $0x18] sm:$0xff] %v1407_v36 }
 0x2aa   : > { %2111 = shalt.err (!%p2108_p1)
}
 0x2ab   : > { %s2168_s21 = smov 128   ;;  %s2169_s7 = smov 8  }
 0x2ac   : > { %1916 = dma.vmem_to_hbm [thread:$0]  (%p2246_p5), %s1695_s23, 512, %s1697_s29, %s1662_s18, %s2168_s21, %s2168_s21, %s2169_s7  }
 0x2ad PF: > { %p1937_p2 = scmp.ge.s32.totalorder %s2160_s28, 2  ;;  %s1718_s15 = sand.u32 1, %s2148_s25  }
 0x2ae   : > { %s1719_s19 = scalar_lea.sflag [#allocation5], %s1718_s15 }
 0x2af   : > { %p1927_p3 = pnand %p1937_p2, %p2250_p6 }
 0x2b1   : > { %p1928_p4 = pneg %p1927_p3 }
 0x2b3   : > { %2139 = dma.done.wait (%p1928_p4), %s1719_s19, 1024  }
 0x2b4   : > { %2141 = vsyncadd (%p1928_p4), %s1719_s19, 4294966272  ;;  %s1729_s0 = scalar_lea.sflag [#allocation11], %s1718_s15 }
 0x2b5   : > { %2143 = dma.done.wait (%p1928_p4), %s1729_s0, 512  }
 0x2b6   : > { %2145 = vsyncadd (%p1928_p4), %s1729_s0, 4294966784  ;;  %p30_p5 = scmp.ge.s32.totalorder %s2233_s30, 4   ;;  %s4252_s25 = smov %s2152_s26 }
 0x2b7   : > { %s4253_s26 = smov %s2156_s27  ;;  %s4254_s27 = smov %s2244_s9 }
 0x2b8   : > { %s4255_s28 = smov %s2233_s30  ;;  %32 = sbr.rel (!%p30_p5) target bundleno = 13 (0xd), region = 105 }
 0x2bd   :  { %1735 = vsyncpa [#allocation5], 1 }
 0x2be   :  { %1737 = vsyncpa [#allocation5 + $0x1], 1 }
 0x2bf   :  { %1738 = vsyncpa [#allocation11], 1 }
 0x2c0   :  { %1740 = vsyncpa [#allocation11 + $0x1], 1 }
 0x2c1   :  { %1741 = vsyncpa [#allocation6], 1 }
 0x2c2   :  { %1743 = vsyncpa [#allocation6 + $0x1], 1 }
 0x2c3   :  { %1744 = vsyncpa [#allocation8], 1 }

</bundles_post_ra>
